<compile_context>
chip_gen: v7x
topology: tpu7x:2x2x1
jax: 0.10.0
libtpu: 0.0.40
codegen_flags: <defaults>
</compile_context>

<pallas_src>
import functools

import jax
import jax.numpy as jnp
from jax.experimental import pallas as pl
from jax.experimental.pallas import tpu as pltpu


def _cdiv(a, b):
    return -(-a // b)


def _excite(y, w1_ref, b1_ref, w2_ref, b2_ref):
    """Linear -> ReLU -> Linear -> sigmoid on pooled activations (f32, (bt, C))."""
    h = jnp.dot(y, w1_ref[...], preferred_element_type=jnp.float32) + b1_ref[...]
    h = jnp.maximum(h, 0.0)
    return jax.nn.sigmoid(
        jnp.dot(h, w2_ref[...], preferred_element_type=jnp.float32) + b2_ref[...]
    )


def _se_flat_kernel(x_ref, pool_ref, w1_ref, b1_ref, w2_ref, b2_ref, exp_ref,
                    o_ref, *, inv_t):
    """Lane-dense path: x_ref/o_ref are (bt, C*T).

    pool_ref (C*T, C) = kron(eye(C), ones(T, 1)) and exp_ref (C, C*T) =
    kron(eye(C), ones(1, T)) turn the per-channel mean and the gate broadcast
    into small MXU matmuls, so the streamed tile is only touched with full
    128-lane vregs and unmasked stores.
    """
    x = x_ref[...]                                                          # (bt, F) native dtype
    y = jnp.dot(x, pool_ref[...], preferred_element_type=jnp.float32) * inv_t   # (bt, C) mean over T
    s = _excite(y, w1_ref, b1_ref, w2_ref, b2_ref)                          # (bt, C) f32 gate
    s_full = jnp.dot(s, exp_ref[...], preferred_element_type=jnp.float32)   # (bt, F)
    # Multiply in x's native dtype (no f32 copy of the streamed tile).  For
    # bf16 inputs this quantizes the gate to bf16 before the multiply.
    o_ref[...] = (x * s_full.astype(x.dtype)).astype(o_ref.dtype)


def _se_direct_kernel(x_ref, w1_ref, b1_ref, w2_ref, b2_ref, o_ref, *, inv_t):
    """Direct path: x_ref/o_ref are (bt, C, T); used when T is already lane-dense."""
    y = jnp.sum(x_ref[...], axis=-1, dtype=jnp.float32) * inv_t             # (bt, C)
    s = _excite(y, w1_ref, b1_ref, w2_ref, b2_ref)
    o_ref[...] = (x_ref[...] * s[:, :, None].astype(x_ref.dtype)).astype(o_ref.dtype)


def _vmem_capacity_bytes():
    """Per-core VMEM capacity; falls back to the smallest generation (v7x, 64 MiB)."""
    try:
        cap = getattr(pltpu.get_tpu_info(), "vmem_capacity_bytes", None)
        if cap:
            return int(cap)
    except Exception:
        pass
    return 64 << 20


def _pick_batch_tile(B, per_batch_bytes, block_budget):
    """Batch rows per grid step: fill the block budget, keep >=2 (ideally >=8) steps."""
    bt = max(1, min(B, block_budget // max(per_batch_bytes, 1)))
    if B >= 2:
        bt8 = _cdiv(B, 8)
        if bt8 * per_batch_bytes >= (1 << 20):
            bt = min(bt, bt8)             # >= 8 grid steps while blocks stay >= 1 MiB
        else:
            bt = min(bt, _cdiv(B, 2))     # at least 2 steps so v7x's second TC gets work
    if bt != B:
        if bt >= 8:
            bt = (bt // 8) * 8            # sublane-aligned block rows
        elif B >= 8 and 8 * per_batch_bytes <= 2 * block_budget:
            bt = 8
    return max(1, min(bt, B))


def se_block(x, w1, b1, w2, b2):
    """x: (B, C, T).  w1: (C, Cr) = torch_W1.T, b1: (Cr,), w2: (Cr, C) = torch_W2.T, b2: (C,)."""
    B, C, T = x.shape
    Cr = w1.shape[1]
    F = C * T
    itemsize = jnp.dtype(x.dtype).itemsize

    vmem_cap = _vmem_capacity_bytes()
    # ~5 MiB blocks on v7x (64 MiB VMEM), ~11 MiB on v5e/v6e (128 MiB).
    block_budget = max(2 << 20, min(12 << 20, vmem_cap // 12))
    per_batch_bytes = C * T * itemsize
    bt = _pick_batch_tile(B, per_batch_bytes, block_budget)
    num_b = _cdiv(B, bt)
    block_bytes = bt * per_batch_bytes
    # TODO(synk): if a single batch slab (C*T) ever exceeds the block budget,
    # switch to a T-tiled two-pass structure (accumulate sum, then scale).

    weight_bytes = (C * Cr + Cr + Cr * C + C) * 4
    b1_2d = b1.reshape(1, Cr).astype(jnp.float32)
    b2_2d = b2.reshape(1, C).astype(jnp.float32)

    # Lane-dense path only pays off when T is not already a multiple of 128,
    # and only when the kron matrices stay small (their matmuls stay hidden
    # under the HBM stream for modest C).
    kron_bytes = F * C * itemsize + F * C * 4
    use_flat = (T % 128 != 0) and (F % 128 == 0) and (kron_bytes <= (4 << 20))

    cost = pl.CostEstimate(
        flops=2 * B * C * T + 4 * B * C * Cr + (4 * B * F * C if use_flat else 0),
        transcendentals=B * C,
        bytes_accessed=2 * B * F * itemsize + 2 * weight_bytes
        + (2 * kron_bytes if use_flat else 0),
    )

    if use_flat:
        eye_x = jnp.eye(C, dtype=x.dtype)
        pool_mat = jnp.repeat(eye_x, T, axis=0)                    # (F, C): kron(eye(C), ones(T,1))
        exp_mat = jnp.repeat(jnp.eye(C, dtype=jnp.float32), T, axis=1)   # (C, F): kron(eye(C), ones(1,T))
        x_flat = x.reshape(B, F)                                   # free bitcast reshape

        vmem_need = 4 * block_bytes + 2 * kron_bytes + 2 * weight_bytes + (4 << 20)
        vmem_limit = int(min(max(vmem_need, 16 << 20), vmem_cap * 3 // 4))

        out_flat = pl.pallas_call(
            functools.partial(_se_flat_kernel, inv_t=1.0 / T),
            out_shape=jax.ShapeDtypeStruct((B, F), x.dtype),
            grid=(num_b,),
            in_specs=[
                pl.BlockSpec((bt, F), lambda b: (b, 0)),
                pl.BlockSpec((F, C), lambda b: (0, 0)),
                pl.BlockSpec((C, Cr), lambda b: (0, 0)),
                pl.BlockSpec((1, Cr), lambda b: (0, 0)),
                pl.BlockSpec((Cr, C), lambda b: (0, 0)),
                pl.BlockSpec((1, C), lambda b: (0, 0)),
                pl.BlockSpec((C, F), lambda b: (0, 0)),
            ],
            out_specs=pl.BlockSpec((bt, F), lambda b: (b, 0)),
            compiler_params=pltpu.CompilerParams(
                dimension_semantics=("parallel",),
                vmem_limit_bytes=vmem_limit,
            ),
            cost_estimate=cost,
        )(x_flat, pool_mat, w1, b1_2d, w2, b2_2d, exp_mat)
        return out_flat.reshape(B, C, T)

    # Direct path: T already lane-dense, or kron matrices would be too large.
    vmem_need = 4 * block_bytes + 2 * weight_bytes + (4 << 20)
    vmem_limit = int(min(max(vmem_need, 16 << 20), vmem_cap * 3 // 4))
    return pl.pallas_call(
        functools.partial(_se_direct_kernel, inv_t=1.0 / T),
        out_shape=jax.ShapeDtypeStruct((B, C, T), x.dtype),
        grid=(num_b,),
        in_specs=[
            pl.BlockSpec((bt, C, T), lambda b: (b, 0, 0)),
            pl.BlockSpec((C, Cr), lambda b: (0, 0)),
            pl.BlockSpec((1, Cr), lambda b: (0, 0)),
            pl.BlockSpec((Cr, C), lambda b: (0, 0)),
            pl.BlockSpec((1, C), lambda b: (0, 0)),
        ],
        out_specs=pl.BlockSpec((bt, C, T), lambda b: (b, 0, 0)),
        compiler_params=pltpu.CompilerParams(
            dimension_semantics=("parallel",),
            vmem_limit_bytes=vmem_limit,
        ),
        cost_estimate=cost,
    )(x, w1, b1_2d, w2, b2_2d)


def se_block_reference(x, w1, b1, w2, b2):
    """Pure-JAX reference matching the PyTorch forward."""
    y = jnp.mean(x, axis=-1)                       # (B, C)
    h = jnp.maximum(y @ w1 + b1, 0.0)              # (B, Cr)
    s = jax.nn.sigmoid(h @ w2 + b2)                # (B, C)
    return x * s[:, :, None]


if __name__ == "__main__":
    # Shapes implied by the module: x is (B, C, T); Linear(C, C//r) and Linear(C//r, C).
    B, C, T, reduction = 16, 32, 64, 8
    Cr = C // reduction

    key = jax.random.PRNGKey(0)
    kx, k1, k2, k3, k4, kx2 = jax.random.split(key, 6)

    x = jax.random.normal(kx, (B, C, T), dtype=jnp.float32)
    # Parameters stored transposed for row-vector matmuls (y @ W).
    # PyTorch Linear(C, C//r).weight has shape (Cr, C); we keep W1 = weight.T.
    w1 = jax.random.normal(k1, (C, Cr), dtype=jnp.float32) * 0.1
    b1 = jax.random.normal(k2, (Cr,), dtype=jnp.float32) * 0.1
    w2 = jax.random.normal(k3, (Cr, C), dtype=jnp.float32) * 0.1
    b2 = jax.random.normal(k4, (C,), dtype=jnp.float32) * 0.1

    # Lane-dense (flattened) path: T = 64 is not a multiple of 128.
    out = jax.block_until_ready(se_block(x, w1, b1, w2, b2))
    ref = se_block_reference(x, w1, b1, w2, b2)
    assert out.shape == (B, C, T)
    assert jnp.allclose(out, ref, atol=2e-5, rtol=2e-5), "flat-path mismatch vs reference"

    # Direct path: T = 128 is already lane-dense.
    x2 = jax.random.normal(kx2, (4, C, 128), dtype=jnp.float32)
    out2 = jax.block_until_ready(se_block(x2, w1, b1, w2, b2))
    ref2 = se_block_reference(x2, w1, b1, w2, b2)
    assert jnp.allclose(out2, ref2, atol=2e-5, rtol=2e-5), "direct-path mismatch vs reference"

    print("KERNEL_OK")
</pallas_src>

<mosaic_0001>
module attributes {stable_mosaic.version = 11 : i64} {
  func.func @_se_flat_kernel(%arg0: i32, %arg1: memref<8x2048xf32, #tpu.memory_space<vmem>>, %arg2: memref<2048x32xf32, #tpu.memory_space<vmem>>, %arg3: memref<32x4xf32, #tpu.memory_space<vmem>>, %arg4: memref<1x4xf32, #tpu.memory_space<vmem>>, %arg5: memref<4x32xf32, #tpu.memory_space<vmem>>, %arg6: memref<1x32xf32, #tpu.memory_space<vmem>>, %arg7: memref<32x2048xf32, #tpu.memory_space<vmem>>, %arg8: memref<8x2048xf32, #tpu.memory_space<vmem>>) attributes {dimension_semantics = [#tpu.dimension_semantics<parallel>], iteration_bounds = array<i64: 2>, scalar_prefetch = 0 : i64, scratch_operands = 0 : i64, tpu.core_type = #tpu.core_type<tc>, window_params = [{transform_indices = @transform_0, window_bounds = array<i64: 8, 2048>}, {pipeline_mode = #tpu.pipeline_mode<synchronous>, transform_indices = @transform_1, window_bounds = array<i64: 2048, 32>}, {pipeline_mode = #tpu.pipeline_mode<synchronous>, transform_indices = @transform_2, window_bounds = array<i64: 32, 4>}, {pipeline_mode = #tpu.pipeline_mode<synchronous>, transform_indices = @transform_3, window_bounds = array<i64: 1, 4>}, {pipeline_mode = #tpu.pipeline_mode<synchronous>, transform_indices = @transform_4, window_bounds = array<i64: 4, 32>}, {pipeline_mode = #tpu.pipeline_mode<synchronous>, transform_indices = @transform_5, window_bounds = array<i64: 1, 32>}, {pipeline_mode = #tpu.pipeline_mode<synchronous>, transform_indices = @transform_6, window_bounds = array<i64: 32, 2048>}, {transform_indices = @transform_7, window_bounds = array<i64: 8, 2048>}]} {
    %c0 = arith.constant 0 : index
    %c0_0 = arith.constant 0 : index
    %0 = vector.load %arg1[%c0, %c0_0] : memref<8x2048xf32, #tpu.memory_space<vmem>>, vector<8x2048xf32>
    %c0_1 = arith.constant 0 : index
    %c0_2 = arith.constant 0 : index
    %1 = vector.load %arg2[%c0_1, %c0_2] : memref<2048x32xf32, #tpu.memory_space<vmem>>, vector<2048x32xf32>
    %cst = arith.constant dense<0.000000e+00> : vector<8x32xf32>
    %2 = tpu.matmul %0, %1, %cst {dimension_numbers = #tpu.dot_dimension_numbers<[1], [0], [0], [1], [0, 0, 1, 1], [], []>} : vector<8x2048xf32>, vector<2048x32xf32>, vector<8x32xf32> -> vector<8x32xf32>
    %cst_3 = arith.constant 1.562500e-02 : f32
    %3 = vector.broadcast %cst_3 : f32 to vector<8x32xf32>
    %4 = arith.mulf %2, %3 : vector<8x32xf32>
    %c0_4 = arith.constant 0 : index
    %c0_5 = arith.constant 0 : index
    %5 = vector.load %arg3[%c0_4, %c0_5] : memref<32x4xf32, #tpu.memory_space<vmem>>, vector<32x4xf32>
    %cst_6 = arith.constant dense<0.000000e+00> : vector<8x4xf32>
    %6 = tpu.matmul %4, %5, %cst_6 {dimension_numbers = #tpu.dot_dimension_numbers<[1], [0], [0], [1], [0, 0, 1, 1], [], []>} : vector<8x32xf32>, vector<32x4xf32>, vector<8x4xf32> -> vector<8x4xf32>
    %c0_7 = arith.constant 0 : index
    %c0_8 = arith.constant 0 : index
    %7 = vector.load %arg4[%c0_7, %c0_8] : memref<1x4xf32, #tpu.memory_space<vmem>>, vector<1x4xf32>
    %8 = vector.broadcast %7 : vector<1x4xf32> to vector<8x4xf32>
    %9 = arith.addf %6, %8 : vector<8x4xf32>
    %cst_9 = arith.constant 0.000000e+00 : f32
    %10 = vector.broadcast %cst_9 : f32 to vector<8x4xf32>
    %11 = arith.maximumf %9, %10 : vector<8x4xf32>
    %c0_10 = arith.constant 0 : index
    %c0_11 = arith.constant 0 : index
    %12 = vector.load %arg5[%c0_10, %c0_11] : memref<4x32xf32, #tpu.memory_space<vmem>>, vector<4x32xf32>
    %cst_12 = arith.constant dense<0.000000e+00> : vector<8x32xf32>
    %13 = tpu.matmul %11, %12, %cst_12 {dimension_numbers = #tpu.dot_dimension_numbers<[1], [0], [0], [1], [0, 0, 1, 1], [], []>} : vector<8x4xf32>, vector<4x32xf32>, vector<8x32xf32> -> vector<8x32xf32>
    %c0_13 = arith.constant 0 : index
    %c0_14 = arith.constant 0 : index
    %14 = vector.load %arg6[%c0_13, %c0_14] : memref<1x32xf32, #tpu.memory_space<vmem>>, vector<1x32xf32>
    %15 = vector.broadcast %14 : vector<1x32xf32> to vector<8x32xf32>
    %16 = arith.addf %13, %15 : vector<8x32xf32>
    %17 = arith.negf %16 : vector<8x32xf32>
    %18 = math.exp %17 : vector<8x32xf32>
    %cst_15 = arith.constant 1.000000e+00 : f32
    %19 = vector.broadcast %cst_15 : f32 to vector<8x32xf32>
    %20 = arith.addf %19, %18 : vector<8x32xf32>
    %21 = arith.divf %19, %20 : vector<8x32xf32>
    %c0_16 = arith.constant 0 : index
    %c0_17 = arith.constant 0 : index
    %22 = vector.load %arg7[%c0_16, %c0_17] : memref<32x2048xf32, #tpu.memory_space<vmem>>, vector<32x2048xf32>
    %cst_18 = arith.constant dense<0.000000e+00> : vector<8x2048xf32>
    %23 = tpu.matmul %21, %22, %cst_18 {dimension_numbers = #tpu.dot_dimension_numbers<[1], [0], [0], [1], [0, 0, 1, 1], [], []>} : vector<8x32xf32>, vector<32x2048xf32>, vector<8x2048xf32> -> vector<8x2048xf32>
    %24 = arith.mulf %0, %23 : vector<8x2048xf32>
    %c0_19 = arith.constant 0 : index
    %c0_20 = arith.constant 0 : index
    %25 = vector.load %arg8[%c0_19, %c0_20] : memref<8x2048xf32, #tpu.memory_space<vmem>>, vector<8x2048xf32>
    tpu.vector_store %arg8[%c0_19, %c0_20], %24 {strides = array<i32>} : memref<8x2048xf32, #tpu.memory_space<vmem>>, vector<8x2048xf32>,
    return
  }
  func.func @transform_0(%arg0: i32) -> (i32, i32) {
    %c0_i32 = arith.constant 0 : i32
    %c0_i32_0 = arith.constant 0 : i32
    return %arg0, %c0_i32 : i32, i32
  }
  func.func @transform_1(%arg0: i32) -> (i32, i32) {
    %c0_i32 = arith.constant 0 : i32
    %c0_i32_0 = arith.constant 0 : i32
    %c0_i32_1 = arith.constant 0 : i32
    return %c0_i32, %c0_i32_0 : i32, i32
  }
  func.func @transform_2(%arg0: i32) -> (i32, i32) {
    %c0_i32 = arith.constant 0 : i32
    %c0_i32_0 = arith.constant 0 : i32
    %c0_i32_1 = arith.constant 0 : i32
    return %c0_i32, %c0_i32_0 : i32, i32
  }
  func.func @transform_3(%arg0: i32) -> (i32, i32) {
    %c0_i32 = arith.constant 0 : i32
    %c0_i32_0 = arith.constant 0 : i32
    %c0_i32_1 = arith.constant 0 : i32
    return %c0_i32, %c0_i32_0 : i32, i32
  }
  func.func @transform_4(%arg0: i32) -> (i32, i32) {
    %c0_i32 = arith.constant 0 : i32
    %c0_i32_0 = arith.constant 0 : i32
    %c0_i32_1 = arith.constant 0 : i32
    return %c0_i32, %c0_i32_0 : i32, i32
  }
  func.func @transform_5(%arg0: i32) -> (i32, i32) {
    %c0_i32 = arith.constant 0 : i32
    %c0_i32_0 = arith.constant 0 : i32
    %c0_i32_1 = arith.constant 0 : i32
    return %c0_i32, %c0_i32_0 : i32, i32
  }
  func.func @transform_6(%arg0: i32) -> (i32, i32) {
    %c0_i32 = arith.constant 0 : i32
    %c0_i32_0 = arith.constant 0 : i32
    %c0_i32_1 = arith.constant 0 : i32
    return %c0_i32, %c0_i32_0 : i32, i32
  }
  func.func @transform_7(%arg0: i32) -> (i32, i32) {
    %c0_i32 = arith.constant 0 : i32
    %c0_i32_0 = arith.constant 0 : i32
    return %arg0, %c0_i32 : i32, i32
  }
}

</mosaic_0001>

<bundles_post_ra>
// kernel: tpu_custom_call.1
= control target key start
LH: loop header
LB: loop body
LE: loop exit
PB: predicated region body
PF: predicated region fallthrough
CT: control target
= control target key end

     0   :  { %12 = vsyncpa [#allocation3], 0  ;;  %s4049_s0 = inlined_call_operand.vmem [shape: f32[16,2048], index: 0, kind: input, shape index: {}]   ;;  %s4050_s1 = inlined_call_operand.vmem [shape: f32[2048,32], index: 1, kind: input, shape index: {}]   ;;  %s4051_s2 = inlined_call_operand.vmem [shape: f32[32,4], index: 2, kind: input, shape index: {}]   ;;  %s4052_s3 = inlined_call_operand.vmem [shape: f32[1,4], index: 3, kind: input, shape index: {}]   ;;  %s4053_s4 = inlined_call_operand.vmem [shape: f32[4,32], index: 4, kind: input, shape index: {}]   ;;  %s4054_s5 = inlined_call_operand.vmem [shape: f32[1,32], index: 5, kind: input, shape index: {}]   ;;  %s4055_s6 = inlined_call_operand.vmem [shape: f32[32,2048], index: 6, kind: input, shape index: {}]   ;;  %s4056_s7 = inlined_call_operand.hbm [shape: f32[16,2048], index: 7, kind: output, shape index: {}]  }
   0x1   :  { %14 = vsyncpa [#allocation3 + $0x1], 0  ;;  %s2846_s24 = smov 0   ;;  %s2848_s25 = smov 0  }
   0x2   :  { %s2850_s26 = smov 0   ;;  %s2852_s27 = smov 0  }
   0x3 LB: > { %s2867_s28 = sadd.s32 4294967295, %s2800_s27   ;;  %s2029_s29 = sadd.s32 4294967294, %s2800_s27   ;;  %s2800_s27 = sphi %s2852_s27, %s4062_s27   ;;  %s2796_s26 = sphi %s2850_s26, %s4061_s26   ;;  %s2792_s25 = sphi %s2848_s25, %s4060_s25   ;;  %s2788_s24 = sphi %s2846_s24, %s4059_s24  }
   0x4   : > { %s2871_s30 = sadd.s32 1, %s2800_s27   ;;  %s179_s8 = sadd.s32 1, %s2796_s26 }
   0x5   : > { %s176_s9 = ssub.s32 %s2800_s27, %s2871_s30  ;;  %p189_p0 = scmp.ne.s32.totalorder %s2796_s26, %s2792_s25 }
   0x6   : > { %p177_p1 = scmp.eq.s32.totalorder %s176_s9, 0  ;;  %p190_p2 = scmp.eq.s32.totalorder %s2867_s28, 1 }
   0x7   : > { %p195_p3 = scmp.ne.s32.totalorder %s2792_s25, %s2788_s24  ;;  %p196_p4 = scmp.eq.s32.totalorder %s2029_s29, 1 }
   0x8   : > { %s2882_s10 = scalar_select %p177_p1, %s2796_s26, %s179_s8  }
   0x9   : > { %p2884_p5 = por %p190_p2, %p189_p0  ;;  %p2888_p6 = por %p196_p4, %p195_p3 }
   0xa   : > { %p2032_p7 = scmp.ge.s32.totalorder %s2800_s27, 1  ;;  %p240_p8 = scmp.lt.s32.totalorder %s2800_s27, 3 }
   0xc   : > { %p241_p9 = pnand %p2032_p7, %p240_p8 }
   0xd   : > { %v309_v0 = vld [vmem:[%s4050_s1 + $0x80] sm:$0xff] (!%p241_p9)  ;;  %v310_v1 = vld [vmem:[%s4050_s1 + $0x88] sm:$0xff] (!%p241_p9)  ;;  %v311_v11 = vld [vmem:[%s4050_s1 + $0x90] sm:$0xff] (!%p241_p9)  ;;  %p272_p10 = scmp.lt.s32.totalorder (!%p241_p9), %s2867_s28, 1  ;;  %vm2803_vm0 = vmmov (!%p241_p9), 0   ;;  %vm1121_vm1 = vcmask (!%p241_p9), 261120  }
   0xe   : > { %244 = sbr.rel (%p241_p9) target bundleno = 1075 (0x433), region = 48  ;;  %v341_v2 = vld [vmem:[%s4050_s1 + $0x180] sm:$0xff] (!%p241_p9)  ;;  %v2360_v3 = vpack.c.bf16 (!%p241_p9), %v310_v1, %v309_v0  ;;  %v342_v4 = vld [vmem:[%s4050_s1 + $0x188] sm:$0xff] (!%p241_p9)  ;;  %v312_v13 = vld [vmem:[%s4050_s1 + $0x98] sm:$0xff] (!%p241_p9)  ;;  %vm1208_vm2 = vcmask (!%p241_p9), 1043456   ;;  %vm1204_vm3 = vcmask (!%p241_p9), 31744  }
   0xf   : > { %v293_v5 = vld [vmem:[%s4050_s1] sm:$0xff] (!%p241_p9)  ;;  %v294_v6 = vld [vmem:[%s4050_s1 + $0x8] sm:$0xff] (!%p241_p9)  ;;  %v2392_v7 = vpack.c.bf16 (!%p241_p9), %v342_v4, %v341_v2  ;;  %v343_v14 = vld [vmem:[%s4050_s1 + $0x190] sm:$0xff] (!%p241_p9)  ;;  %v2364_v16 = vpack.c.bf16 (!%p241_p9), %v312_v13, %v311_v11  ;;  %s2805_s8 = smov (!%p241_p9), [#allocation2]  }
  0x10   : > { %v2362_v8 = vpack.c.bf16 (!%p241_p9), %v294_v6, %v293_v5  ;;  %v325_v9 = vld [vmem:[%s4050_s1 + $0x100] sm:$0xff] (!%p241_p9)  ;;  %v326_v10 = vld [vmem:[%s4050_s1 + $0x108] sm:$0xff] (!%p241_p9)  ;;  %2361 = vmatprep.subr.bf16.mxu0 (!%p241_p9), %v2360_v3  ;;  %v344_v15 = vld [vmem:[%s4050_s1 + $0x198] sm:$0xff] (!%p241_p9) }
  0x11   : > { %v2394_v12 = vpack.c.bf16 (!%p241_p9), %v326_v10, %v325_v9  ;;  %2393 = vmatprep.subr.bf16.mxu1 (!%p241_p9), %v2392_v7  ;;  %v2396_v17 = vpack.c.bf16 (!%p241_p9), %v344_v15, %v343_v14  ;;  %v295_v18 = vld [vmem:[%s4050_s1 + $0x10] sm:$0xff] (!%p241_p9)  ;;  %v296_v19 = vld [vmem:[%s4050_s1 + $0x18] sm:$0xff] (!%p241_p9)  ;;  %v313_v23 = vld [vmem:[%s4050_s1 + $0xa0] sm:$0xff] (!%p241_p9) }
  0x12   : > { %2363 = vmatpush3.bf16.msra.mxu0 (!%p241_p9), %v2362_v8  ;;  %v327_v20 = vld [vmem:[%s4050_s1 + $0x110] sm:$0xff] (!%p241_p9)  ;;  %v2366_v21 = vpack.c.bf16 (!%p241_p9), %v296_v19, %v295_v18  ;;  %v328_v22 = vld [vmem:[%s4050_s1 + $0x118] sm:$0xff] (!%p241_p9)  ;;  %v314_v24 = vld [vmem:[%s4050_s1 + $0xa8] sm:$0xff] (!%p241_p9) }
  0x13   : > { %2395 = vmatpush3.bf16.msra.mxu1 (!%p241_p9), %v2394_v12  ;;  %2365 = vmatprep.subr.bf16.mxu0 (!%p241_p9), %v2364_v16  ;;  %v2398_v25 = vpack.c.bf16 (!%p241_p9), %v328_v22, %v327_v20  ;;  %v2368_v26 = vpack.c.bf16 (!%p241_p9), %v314_v24, %v313_v23  ;;  %v345_v27 = vld [vmem:[%s4050_s1 + $0x1a0] sm:$0xff] (!%p241_p9)  ;;  %v346_v28 = vld [vmem:[%s4050_s1 + $0x1a8] sm:$0xff] (!%p241_p9)  ;;  %v315_v35 = vld [vmem:[%s4050_s1 + $0xb0] sm:$0xff] (!%p241_p9) }
  0x14   : > { %2397 = vmatprep.subr.bf16.mxu1 (!%p241_p9), %v2396_v17  ;;  %v297_v29 = vld [vmem:[%s4050_s1 + $0x20] sm:$0xff] (!%p241_p9)  ;;  %v2400_v30 = vpack.c.bf16 (!%p241_p9), %v346_v28, %v345_v27  ;;  %v298_v31 = vld [vmem:[%s4050_s1 + $0x28] sm:$0xff] (!%p241_p9)  ;;  %v316_v36 = vld [vmem:[%s4050_s1 + $0xb8] sm:$0xff] (!%p241_p9) }
  0x15   : > { %v329_v32 = vld [vmem:[%s4050_s1 + $0x120] sm:$0xff]  ;;  %v330_v33 = vld [vmem:[%s4050_s1 + $0x128] sm:$0xff]  ;;  %v2370_v34 = vpack.c.bf16 %v298_v31, %v297_v29  ;;  %v347_v37 = vld [vmem:[%s4050_s1 + $0x1b0] sm:$0xff]  ;;  %v2372_v39 = vpack.c.bf16 %v316_v36, %v315_v35  ;;  %s3006_s15 = scalar_select %p272_p10, %s2867_s28, 1 }
  0x16   : > { %2367 = vmatpush3.bf16.msra.mxu0 %v2366_v21  ;;  %v2402_v38 = vpack.c.bf16 %v330_v33, %v329_v32  ;;  %v348_v40 = vld [vmem:[%s4050_s1 + $0x1b8] sm:$0xff]  ;;  %v299_v41 = vld [vmem:[%s4050_s1 + $0x30] sm:$0xff]  ;;  %v317_v46 = vld [vmem:[%s4050_s1 + $0xc0] sm:$0xff] }
  0x17   : > { %2399 = vmatpush3.bf16.msra.mxu1 %v2398_v25  ;;  %2369 = vmatprep.subr.bf16.mxu0 %v2368_v26  ;;  %v300_v42 = vld [vmem:[%s4050_s1 + $0x38] sm:$0xff]  ;;  %v2404_v43 = vpack.c.bf16 %v348_v40, %v347_v37  ;;  %v331_v44 = vld [vmem:[%s4050_s1 + $0x130] sm:$0xff]  ;;  %v318_v47 = vld [vmem:[%s4050_s1 + $0xc8] sm:$0xff]  ;;  %s2055_s19 = sshll.u32 %s3006_s15, 7  ;;  %s2742_s15 = sshll.u32 %s2805_s8, 4  ;;  %s2743_s15 = int_to_ptr.vmem [resolvable:$false] %s2742_s15 }
  0x18   : > { %2401 = vmatprep.subr.bf16.mxu1 %v2400_v30  ;;  %v332_v45 = vld [vmem:[%s4050_s1 + $0x138] sm:$0xff]  ;;  %v349_v48 = vld [vmem:[%s4050_s1 + $0x1c0] sm:$0xff]  ;;  %v350_v49 = vld [vmem:[%s4050_s1 + $0x1c8] sm:$0xff]  ;;  %v2374_v50 = vpack.c.bf16 %v300_v42, %v299_v41  ;;  %v2376_v52 = vpack.c.bf16 %v318_v47, %v317_v46  ;;  %s3054_s21 = scalar_lea.vmem %s4049_s0, %s2055_s19  ;;  %s269_s19 = sand.u32 1, %s2792_s25  }
  0x19   : > { %v2406_v51 = vpack.c.bf16 %v332_v45, %v331_v44  ;;  %v301_v53 = vld [vmem:[%s4050_s1 + $0x40] sm:$0xff]  ;;  %v302_v54 = vld [vmem:[%s4050_s1 + $0x48] sm:$0xff]  ;;  %v2408_v56 = vpack.c.bf16 %v350_v49, %v349_v48  ;;  %v319_v58 = vld [vmem:[%s4050_s1 + $0xd0] sm:$0xff]  ;;  %s2033_s16 = sshll.u32 %s269_s19, 7  ;;  %s2744_s9 = scalar_lea.vmem %s2743_s15, 4096 }
  0x1a   : > { %2371 = vmatpush3.bf16.msra.mxu0 %v2370_v34  ;;  %v333_v55 = vld [vmem:[%s4050_s1 + $0x140] sm:$0xff]  ;;  %v334_v57 = vld [vmem:[%s4050_s1 + $0x148] sm:$0xff]  ;;  %v320_v59 = vld [vmem:[%s4050_s1 + $0xd8] sm:$0xff]  ;;  %v2378_v62 = vpack.c.bf16 %v302_v54, %v301_v53  ;;  %s3970_s17 = scalar_lea.vmem [#allocation2], %s2033_s16 }
  0x1b   : > { %2403 = vmatpush3.bf16.msra.mxu1 %v2402_v38  ;;  %2373 = vmatprep.subr.bf16.mxu0 %v2372_v39  ;;  %v351_v60 = vld [vmem:[%s4050_s1 + $0x1d0] sm:$0xff]  ;;  %v352_v61 = vld [vmem:[%s4050_s1 + $0x1d8] sm:$0xff]  ;;  %v2410_v63 = vpack.c.bf16 %v334_v57, %v333_v55  ;;  %v2380_v0 = vpack.c.bf16 %v320_v59, %v319_v58  ;;  %v321_v6 = vld [vmem:[%s4050_s1 + $0xe0] sm:$0xff]  ;;  %s1970_s18 = sshll.u32 %s3970_s17, 4  ;;  %s4003_s18 = int_to_ptr.vmem [resolvable:$true] %s1970_s18 }
  0x1c   : > { %2405 = vmatprep.subr.bf16.mxu1 %v2404_v43  ;;  %v303_v1 = vld [vmem:[%s4050_s1 + $0x50] sm:$0xff]  ;;  %v304_v2 = vld [vmem:[%s4050_s1 + $0x58] sm:$0xff]  ;;  %v2412_v4 = vpack.c.bf16 %v352_v61, %v351_v60  ;;  %v322_v7 = vld [vmem:[%s4050_s1 + $0xe8] sm:$0xff]  ;;  %s2738_s29 = scalar_lea.vmem %s4003_s18, 2048  ;;  %p2745_p0 = scmp.lt.s32.totalorder %s4003_s18, %s2743_s15 }
  0x1d   : > { %v335_v3 = vld [vmem:[%s4050_s1 + $0x150] sm:$0xff]  ;;  %v336_v5 = vld [vmem:[%s4050_s1 + $0x158] sm:$0xff]  ;;  %v353_v8 = vld [vmem:[%s4050_s1 + $0x1e0] sm:$0xff]  ;;  %v2382_v10 = vpack.c.bf16 %v304_v2, %v303_v1  ;;  %v2384_v14 = vpack.c.bf16 %v322_v7, %v321_v6  ;;  %p2739_p11 = scmp.ne.s32.totalorder %s4003_s18, %s2738_s29  ;;  %p2746_p1 = scmp.lt.s32.totalorder %s2744_s9, %s2738_s29 }
  0x1e   : > { %2375 = vmatpush3.bf16.msra.mxu0 %v2374_v50  ;;  %v354_v9 = vld [vmem:[%s4050_s1 + $0x1e8] sm:$0xff]  ;;  %v305_v11 = vld [vmem:[%s4050_s1 + $0x60] sm:$0xff]  ;;  %v2414_v13 = vpack.c.bf16 %v336_v5, %v335_v3  ;;  %v280_v17 = vld [vmem:[%s3054_s21 + $0x18] sm:$0xff] }
  0x1f   : > { %2407 = vmatpush3.bf16.msra.mxu1 %v2406_v51  ;;  %2377 = vmatprep.subr.bf16.mxu0 %v2376_v52  ;;  %v306_v12 = vld [vmem:[%s4050_s1 + $0x68] sm:$0xff]  ;;  %v337_v15 = vld [vmem:[%s4050_s1 + $0x160] sm:$0xff]  ;;  %v2416_v18 = vpack.c.bf16 %v354_v9, %v353_v8  ;;  %v323_v20 = vld [vmem:[%s4050_s1 + $0xf0] sm:$0xff]  ;;  %p2740_p12 = pnand %p2739_p11, %p2884_p5  ;;  %p2747_p2 = por %p2746_p1, %p2745_p0 }
  0x20   : > { %2409 = vmatprep.subr.bf16.mxu1 %v2408_v56  ;;  %v278_v16 = vld [vmem:[%s3054_s21 + $0x8] sm:$0xff]  ;;  %v324_v21 = vld [vmem:[%s4050_s1 + $0xf8] sm:$0xff]  ;;  %v355_v22 = vld [vmem:[%s4050_s1 + $0x1f0] sm:$0xff]  ;;  %683 = vmatprep.mubr.f32.mxu1 %v280_v17  ;;  %v2386_v24 = vpack.c.bf16 %v306_v12, %v305_v11 }
  0x21   : > { %v338_v19 = vld [vmem:[%s4050_s1 + $0x168] sm:$0xff]  ;;  %613 = vmatprep.mubr.f32.mxu0 %v278_v16  ;;  %v356_v23 = vld [vmem:[%s4050_s1 + $0x1f8] sm:$0xff]  ;;  %v2388_v26 = vpack.c.bf16 %v324_v21, %v323_v20  ;;  %v307_v27 = vld [vmem:[%s4050_s1 + $0x70] sm:$0xff]  ;;  %p2741_p13 = pneg %p2740_p12 }
  0x22   : > { %2379 = vmatpush3.bf16.msra.mxu0 %v2378_v62  ;;  %v2418_v25 = vpack.c.bf16 %v338_v19, %v337_v15  ;;  %v308_v28 = vld [vmem:[%s4050_s1 + $0x78] sm:$0xff]  ;;  %v339_v29 = vld [vmem:[%s4050_s1 + $0x170] sm:$0xff]  ;;  %v2420_v30 = vpack.c.bf16 %v356_v23, %v355_v22  ;;  %v373_v32 = vld [vmem:[%s4050_s1 + $0x280] sm:$0xff] }
  0x23   : > { %2411 = vmatpush3.bf16.msra.mxu1 %v2410_v63  ;;  %2381 = vmatprep.subr.bf16.mxu0 %v2380_v0  ;;  %v340_v31 = vld [vmem:[%s4050_s1 + $0x178] sm:$0xff]  ;;  %v374_v33 = vld [vmem:[%s4050_s1 + $0x288] sm:$0xff]  ;;  %v405_v34 = vld [vmem:[%s4050_s1 + $0x380] sm:$0xff]  ;;  %v2390_v36 = vpack.c.bf16 %v308_v28, %v307_v27  ;;  %p2748_p3 = pnand %p2747_p2, %p2741_p13 }
  0x24   : > { %2413 = vmatprep.subr.bf16.mxu1 %v2412_v4  ;;  %v406_v35 = vld [vmem:[%s4050_s1 + $0x388] sm:$0xff]  ;;  %v2422_v37 = vpack.c.bf16 %v340_v31, %v339_v29  ;;  %v2424_v38 = vpack.c.bf16 %v374_v33, %v373_v32  ;;  %v357_v39 = vld [vmem:[%s4050_s1 + $0x200] sm:$0xff]  ;;  %v375_v44 = vld [vmem:[%s4050_s1 + $0x290] sm:$0xff] }
  0x25   : > { %v358_v40 = vld [vmem:[%s4050_s1 + $0x208] sm:$0xff]  ;;  %v389_v41 = vld [vmem:[%s4050_s1 + $0x300] sm:$0xff]  ;;  %v2456_v42 = vpack.c.bf16 %v406_v35, %v405_v34  ;;  %v376_v45 = vld [vmem:[%s4050_s1 + $0x298] sm:$0xff] }
  0x26   : > { %2383 = vmatpush3.bf16.msra.mxu0 %v2382_v10  ;;  %v390_v43 = vld [vmem:[%s4050_s1 + $0x308] sm:$0xff]  ;;  %v407_v46 = vld [vmem:[%s4050_s1 + $0x390] sm:$0xff]  ;;  %v408_v47 = vld [vmem:[%s4050_s1 + $0x398] sm:$0xff]  ;;  %v2426_v50 = vpack.c.bf16 %v358_v40, %v357_v39  ;;  %v2428_v52 = vpack.c.bf16 %v376_v45, %v375_v44 }
  0x27   : > { %2415 = vmatpush3.bf16.msra.mxu1 %v2414_v13  ;;  %2385 = vmatprep.subr.bf16.mxu0 %v2384_v14  ;;  %v277_v48 = vld [vmem:[%s3054_s21] sm:$0xff]  ;;  %v279_v49 = vld [vmem:[%s3054_s21 + $0x10] sm:$0xff]  ;;  %v2458_v51 = vpack.c.bf16 %v390_v43, %v389_v41  ;;  %v360_v54 = vld [vmem:[%s4050_s1 + $0x218] sm:$0xff]  ;;  %v2460_v56 = vpack.c.bf16 %v408_v47, %v407_v46 }
  0x28   : > { %2417 = vmatprep.subr.bf16.mxu1 %v2416_v18  ;;  %v359_v53 = vld [vmem:[%s4050_s1 + $0x210] sm:$0xff]  ;;  %v392_v57 = vld [vmem:[%s4050_s1 + $0x318] sm:$0xff]  ;;  %v377_v58 = vld [vmem:[%s4050_s1 + $0x2a0] sm:$0xff] }
  0x29   : > { %v391_v55 = vld [vmem:[%s4050_s1 + $0x310] sm:$0xff]  ;;  %v378_v59 = vld [vmem:[%s4050_s1 + $0x2a8] sm:$0xff]  ;;  %v409_v60 = vld [vmem:[%s4050_s1 + $0x3a0] sm:$0xff]  ;;  %v2430_v62 = vpack.c.bf16 %v360_v54, %v359_v53 }
  0x2a   : > { %2387 = vmatpush3.bf16.msra.mxu0 %v2386_v24  ;;  %v410_v61 = vld [vmem:[%s4050_s1 + $0x3a8] sm:$0xff]  ;;  %v2462_v63 = vpack.c.bf16 %v392_v57, %v391_v55  ;;  %v2432_v0 = vpack.c.bf16 %v378_v59, %v377_v58  ;;  %v361_v1 = vld [vmem:[%s4050_s1 + $0x220] sm:$0xff]  ;;  %v379_v6 = vld [vmem:[%s4050_s1 + $0x2b0] sm:$0xff] }
  0x2b   : > { %2419 = vmatpush3.bf16.msra.mxu1 %v2418_v25  ;;  %2389 = vmatprep.subr.bf16.mxu0 %v2388_v26  ;;  %v362_v2 = vld [vmem:[%s4050_s1 + $0x228] sm:$0xff]  ;;  %v393_v3 = vld [vmem:[%s4050_s1 + $0x320] sm:$0xff]  ;;  %v2464_v4 = vpack.c.bf16 %v410_v61, %v409_v60  ;;  %v380_v7 = vld [vmem:[%s4050_s1 + $0x2b8] sm:$0xff] }
  0x2c   : > { %2421 = vmatprep.subr.bf16.mxu1 %v2420_v30  ;;  %v394_v5 = vld [vmem:[%s4050_s1 + $0x328] sm:$0xff]  ;;  %v411_v8 = vld [vmem:[%s4050_s1 + $0x3b0] sm:$0xff]  ;;  %v412_v9 = vld [vmem:[%s4050_s1 + $0x3b8] sm:$0xff]  ;;  %v2434_v10 = vpack.c.bf16 %v362_v2, %v361_v1  ;;  %v2436_v12 = vpack.c.bf16 %v380_v7, %v379_v6 }
  0x2d   : > { %v2466_v11 = vpack.c.bf16 %v394_v5, %v393_v3  ;;  %v363_v13 = vld [vmem:[%s4050_s1 + $0x230] sm:$0xff]  ;;  %v364_v14 = vld [vmem:[%s4050_s1 + $0x238] sm:$0xff]  ;;  %v2468_v16 = vpack.c.bf16 %v412_v9, %v411_v8  ;;  %v381_v18 = vld [vmem:[%s4050_s1 + $0x2c0] sm:$0xff] }
  0x2e   : > { %2391 = vmatpush3.bf16.msra.mxu0 %v2390_v36  ;;  %v395_v15 = vld [vmem:[%s4050_s1 + $0x330] sm:$0xff]  ;;  %v396_v17 = vld [vmem:[%s4050_s1 + $0x338] sm:$0xff]  ;;  %v382_v19 = vld [vmem:[%s4050_s1 + $0x2c8] sm:$0xff]  ;;  %v2438_v22 = vpack.c.bf16 %v364_v14, %v363_v13 }
  0x2f   : > { %2423 = vmatpush3.bf16.msra.mxu1 %v2422_v37  ;;  %2425 = vmatprep.subr.bf16.mxu0 %v2424_v38  ;;  %v413_v20 = vld [vmem:[%s4050_s1 + $0x3c0] sm:$0xff]  ;;  %v414_v21 = vld [vmem:[%s4050_s1 + $0x3c8] sm:$0xff]  ;;  %v2470_v25 = vpack.c.bf16 %v396_v17, %v395_v15  ;;  %v2440_v26 = vpack.c.bf16 %v382_v19, %v381_v18  ;;  %v284_v29 = vld [vmem:[%s3054_s21 + $0x38] sm:$0xff] }
  0x30   : > { %2457 = vmatprep.subr.bf16.mxu1 %v2456_v42  ;;  %v365_v23 = vld [vmem:[%s4050_s1 + $0x240] sm:$0xff]  ;;  %v282_v24 = vld [vmem:[%s3054_s21 + $0x28] sm:$0xff]  ;;  %v2472_v30 = vpack.c.bf16 %v414_v21, %v413_v20  ;;  %v383_v32 = vld [vmem:[%s4050_s1 + $0x2d0] sm:$0xff] }
  0x31   : > { %614 = vmatmul.mubr.f32.vlgmr.msra.gmra.mrb[0].mxu0 %v277_v48  ;;  %v366_v27 = vld [vmem:[%s4050_s1 + $0x248] sm:$0xff]  ;;  %v397_v28 = vld [vmem:[%s4050_s1 + $0x340] sm:$0xff]  ;;  %v384_v33 = vld [vmem:[%s4050_s1 + $0x2d8] sm:$0xff] }
  0x32   : > { %684 = vmatmul.mubr.f32.vlgmr.msra.gmra.mrb[0].mxu1 %v279_v49  ;;  %2427 = vmatpush3.bf16.msra.mxu0 %v2426_v50  ;;  %v398_v31 = vld [vmem:[%s4050_s1 + $0x348] sm:$0xff]  ;;  %v415_v34 = vld [vmem:[%s4050_s1 + $0x3d0] sm:$0xff]  ;;  %v416_v35 = vld [vmem:[%s4050_s1 + $0x3d8] sm:$0xff]  ;;  %v2442_v36 = vpack.c.bf16 %v366_v27, %v365_v23  ;;  %v2444_v38 = vpack.c.bf16 %v384_v33, %v383_v32 }
  0x33   : > { %2459 = vmatpush3.bf16.msra.mxu1 %v2458_v51  ;;  %2429 = vmatprep.subr.bf16.mxu0 %v2428_v52  ;;  %v2474_v37 = vpack.c.bf16 %v398_v31, %v397_v28  ;;  %v367_v39 = vld [vmem:[%s4050_s1 + $0x250] sm:$0xff]  ;;  %v368_v40 = vld [vmem:[%s4050_s1 + $0x258] sm:$0xff]  ;;  %v2476_v42 = vpack.c.bf16 %v416_v35, %v415_v34  ;;  %v385_v44 = vld [vmem:[%s4050_s1 + $0x2e0] sm:$0xff] }
  0x34   : > { %2461 = vmatprep.subr.bf16.mxu1 %v2460_v56  ;;  %753 = vmatprep.mubr.f32.mxu0 %v282_v24  ;;  %v399_v41 = vld [vmem:[%s4050_s1 + $0x350] sm:$0xff]  ;;  %v400_v43 = vld [vmem:[%s4050_s1 + $0x358] sm:$0xff]  ;;  %v386_v45 = vld [vmem:[%s4050_s1 + $0x2e8] sm:$0xff]  ;;  %v2446_v48 = vpack.c.bf16 %v368_v40, %v367_v39 }
  0x35   : > { %823 = vmatprep.mubr.f32.mxu1 %v284_v29  ;;  %v417_v46 = vld [vmem:[%s4050_s1 + $0x3e0] sm:$0xff]  ;;  %v418_v47 = vld [vmem:[%s4050_s1 + $0x3e8] sm:$0xff]  ;;  %v2478_v49 = vpack.c.bf16 %v400_v43, %v399_v41  ;;  %v2448_v50 = vpack.c.bf16 %v386_v45, %v385_v44  ;;  %v387_v56 = vld [vmem:[%s4050_s1 + $0x2f0] sm:$0xff] }
  0x36   : > { %2431 = vmatpush3.bf16.msra.mxu0 %v2430_v62  ;;  %v369_v51 = vld [vmem:[%s4050_s1 + $0x260] sm:$0xff]  ;;  %v370_v52 = vld [vmem:[%s4050_s1 + $0x268] sm:$0xff]  ;;  %v2480_v54 = vpack.c.bf16 %v418_v47, %v417_v46  ;;  %v388_v57 = vld [vmem:[%s4050_s1 + $0x2f8] sm:$0xff] }
  0x37   : > { %2463 = vmatpush3.bf16.msra.mxu1 %v2462_v63  ;;  %2433 = vmatprep.subr.bf16.mxu0 %v2432_v0  ;;  %v401_v53 = vld [vmem:[%s4050_s1 + $0x360] sm:$0xff]  ;;  %v402_v55 = vld [vmem:[%s4050_s1 + $0x368] sm:$0xff]  ;;  %v419_v58 = vld [vmem:[%s4050_s1 + $0x3f0] sm:$0xff]  ;;  %v2450_v60 = vpack.c.bf16 %v370_v52, %v369_v51  ;;  %v2452_v62 = vpack.c.bf16 %v388_v57, %v387_v56 }
  0x38   : > { %2465 = vmatprep.subr.bf16.mxu1 %v2464_v4  ;;  %v420_v59 = vld [vmem:[%s4050_s1 + $0x3f8] sm:$0xff]  ;;  %v2482_v61 = vpack.c.bf16 %v402_v55, %v401_v53  ;;  %v371_v63 = vld [vmem:[%s4050_s1 + $0x270] sm:$0xff]  ;;  %v437_v4 = vld [vmem:[%s4050_s1 + $0x480] sm:$0xff] }
  0x39   : > { %v372_v0 = vld [vmem:[%s4050_s1 + $0x278] sm:$0xff]  ;;  %v403_v1 = vld [vmem:[%s4050_s1 + $0x370] sm:$0xff]  ;;  %v2484_v2 = vpack.c.bf16 %v420_v59, %v419_v58  ;;  %v438_v5 = vld [vmem:[%s4050_s1 + $0x488] sm:$0xff] }
  0x3a   : > { %2435 = vmatpush3.bf16.msra.mxu0 %v2434_v10  ;;  %v404_v3 = vld [vmem:[%s4050_s1 + $0x378] sm:$0xff]  ;;  %v469_v6 = vld [vmem:[%s4050_s1 + $0x580] sm:$0xff]  ;;  %v470_v7 = vld [vmem:[%s4050_s1 + $0x588] sm:$0xff]  ;;  %v2454_v8 = vpack.c.bf16 %v372_v0, %v371_v63  ;;  %v2488_v10 = vpack.c.bf16 %v438_v5, %v437_v4 }
  0x3b   : > { %2467 = vmatpush3.bf16.msra.mxu1 %v2466_v11  ;;  %2437 = vmatprep.subr.bf16.mxu0 %v2436_v12  ;;  %v2486_v9 = vpack.c.bf16 %v404_v3, %v403_v1  ;;  %v421_v11 = vld [vmem:[%s4050_s1 + $0x400] sm:$0xff]  ;;  %v422_v12 = vld [vmem:[%s4050_s1 + $0x408] sm:$0xff]  ;;  %v2520_v14 = vpack.c.bf16 %v470_v7, %v469_v6  ;;  %v440_v17 = vld [vmem:[%s4050_s1 + $0x498] sm:$0xff] }
  0x3c   : > { %2469 = vmatprep.subr.bf16.mxu1 %v2468_v16  ;;  %v453_v13 = vld [vmem:[%s4050_s1 + $0x500] sm:$0xff]  ;;  %v454_v15 = vld [vmem:[%s4050_s1 + $0x508] sm:$0xff]  ;;  %v439_v16 = vld [vmem:[%s4050_s1 + $0x490] sm:$0xff]  ;;  %v2490_v21 = vpack.c.bf16 %v422_v12, %v421_v11 }
  0x3d   : > { %v471_v18 = vld [vmem:[%s4050_s1 + $0x590] sm:$0xff]  ;;  %v472_v19 = vld [vmem:[%s4050_s1 + $0x598] sm:$0xff]  ;;  %v3333_v20 = vld [vmem:[%s3054_s21 + $0x20] sm:$0xff]  ;;  %v2522_v23 = vpack.c.bf16 %v454_v15, %v453_v13  ;;  %v2492_v24 = vpack.c.bf16 %v440_v17, %v439_v16 }
  0x3e   : > { %2439 = vmatpush3.bf16.msra.mxu0 %v2438_v22  ;;  %v3336_v22 = vld [vmem:[%s3054_s21 + $0x30] sm:$0xff]  ;;  %v2524_v28 = vpack.c.bf16 %v472_v19, %v471_v18  ;;  %v456_v29 = vld [vmem:[%s4050_s1 + $0x518] sm:$0xff]  ;;  %v442_v31 = vld [vmem:[%s4050_s1 + $0x4a8] sm:$0xff] }
  0x3f   : > { %2471 = vmatpush3.bf16.msra.mxu1 %v2470_v25  ;;  %2441 = vmatprep.subr.bf16.mxu0 %v2440_v26  ;;  %v423_v25 = vld [vmem:[%s4050_s1 + $0x410] sm:$0xff]  ;;  %v424_v26 = vld [vmem:[%s4050_s1 + $0x418] sm:$0xff]  ;;  %v473_v32 = vld [vmem:[%s4050_s1 + $0x5a0] sm:$0xff] }
  0x40   : > { %2473 = vmatprep.subr.bf16.mxu1 %v2472_v30  ;;  %v455_v27 = vld [vmem:[%s4050_s1 + $0x510] sm:$0xff]  ;;  %v441_v30 = vld [vmem:[%s4050_s1 + $0x4a0] sm:$0xff]  ;;  %v474_v33 = vld [vmem:[%s4050_s1 + $0x5a8] sm:$0xff]  ;;  %v2494_v35 = vpack.c.bf16 %v424_v26, %v423_v25 }
  0x41   : > { %v3364_v34 = vld [vmem:[%s3054_s21 + $0x48] sm:$0xff]  ;;  %v425_v39 = vld [vmem:[%s4050_s1 + $0x420] sm:$0xff]  ;;  %v443_v44 = vld [vmem:[%s4050_s1 + $0x4b0] sm:$0xff] }
  0x42   : > { %2443 = vmatpush3.bf16.msra.mxu0 %v2442_v36  ;;  %v3368_v36 = vld [vmem:[%s3054_s21 + $0x58] sm:$0xff]  ;;  %v426_v40 = vld [vmem:[%s4050_s1 + $0x428] sm:$0xff]  ;;  %v457_v41 = vld [vmem:[%s4050_s1 + $0x520] sm:$0xff] }
  0x43   : > { %2475 = vmatpush3.bf16.msra.mxu1 %v2474_v37  ;;  %2445 = vmatprep.subr.bf16.mxu0 %v2444_v38  ;;  %v2526_v37 = vpack.c.bf16 %v456_v29, %v455_v27  ;;  %v2496_v38 = vpack.c.bf16 %v442_v31, %v441_v30  ;;  %v458_v43 = vld [vmem:[%s4050_s1 + $0x528] sm:$0xff]  ;;  %v444_v45 = vld [vmem:[%s4050_s1 + $0x4b8] sm:$0xff]  ;;  %v475_v46 = vld [vmem:[%s4050_s1 + $0x5b0] sm:$0xff] }
  0x44   : > { %2477 = vmatprep.subr.bf16.mxu1 %v2476_v42  ;;  %v2528_v42 = vpack.c.bf16 %v474_v33, %v473_v32  ;;  %v476_v47 = vld [vmem:[%s4050_s1 + $0x5b8] sm:$0xff]  ;;  %v427_v51 = vld [vmem:[%s4050_s1 + $0x430] sm:$0xff]  ;;  %v445_v56 = vld [vmem:[%s4050_s1 + $0x4c0] sm:$0xff] }
  0x45   : > { %v428_v52 = vld [vmem:[%s4050_s1 + $0x438] sm:$0xff]  ;;  %v459_v53 = vld [vmem:[%s4050_s1 + $0x530] sm:$0xff]  ;;  %v446_v57 = vld [vmem:[%s4050_s1 + $0x4c8] sm:$0xff] }
  0x46   : > { %2447 = vmatpush3.bf16.msra.mxu0 %v2446_v48  ;;  %v2498_v48 = vpack.c.bf16 %v426_v40, %v425_v39  ;;  %v460_v55 = vld [vmem:[%s4050_s1 + $0x538] sm:$0xff]  ;;  %v477_v58 = vld [vmem:[%s4050_s1 + $0x5c0] sm:$0xff]  ;;  %v478_v59 = vld [vmem:[%s4050_s1 + $0x5c8] sm:$0xff] }
  0x47   : > { %2479 = vmatpush3.bf16.msra.mxu1 %v2478_v49  ;;  %2449 = vmatprep.subr.bf16.mxu0 %v2448_v50  ;;  %v2530_v49 = vpack.c.bf16 %v458_v43, %v457_v41  ;;  %v2500_v50 = vpack.c.bf16 %v444_v45, %v443_v44  ;;  %v429_v63 = vld [vmem:[%s4050_s1 + $0x440] sm:$0xff]  ;;  %v430_v0 = vld [vmem:[%s4050_s1 + $0x448] sm:$0xff]  ;;  %v447_v4 = vld [vmem:[%s4050_s1 + $0x4d0] sm:$0xff] }
  0x48   : > { %2481 = vmatprep.subr.bf16.mxu1 %v2480_v54  ;;  %v2532_v54 = vpack.c.bf16 %v476_v47, %v475_v46  ;;  %v461_v1 = vld [vmem:[%s4050_s1 + $0x540] sm:$0xff]  ;;  %v462_v3 = vld [vmem:[%s4050_s1 + $0x548] sm:$0xff]  ;;  %v448_v5 = vld [vmem:[%s4050_s1 + $0x4d8] sm:$0xff] }
  0x49   : > { %v479_v6 = vld [vmem:[%s4050_s1 + $0x5d0] sm:$0xff]  ;;  %v480_v7 = vld [vmem:[%s4050_s1 + $0x5d8] sm:$0xff]  ;;  %v449_v16 = vld [vmem:[%s4050_s1 + $0x4e0] sm:$0xff] }
  0x4a   : > { %2451 = vmatpush3.bf16.msra.mxu0 %v2450_v60  ;;  %v2502_v60 = vpack.c.bf16 %v428_v52, %v427_v51  ;;  %v431_v11 = vld [vmem:[%s4050_s1 + $0x450] sm:$0xff]  ;;  %v432_v12 = vld [vmem:[%s4050_s1 + $0x458] sm:$0xff]  ;;  %v450_v17 = vld [vmem:[%s4050_s1 + $0x4e8] sm:$0xff] }
  0x4b   : > { %2483 = vmatpush3.bf16.msra.mxu1 %v2482_v61  ;;  %2453 = vmatprep.subr.bf16.mxu0 %v2452_v62  ;;  %v2534_v61 = vpack.c.bf16 %v460_v55, %v459_v53  ;;  %v2504_v62 = vpack.c.bf16 %v446_v57, %v445_v56  ;;  %v463_v13 = vld [vmem:[%s4050_s1 + $0x550] sm:$0xff]  ;;  %v464_v15 = vld [vmem:[%s4050_s1 + $0x558] sm:$0xff]  ;;  %v481_v18 = vld [vmem:[%s4050_s1 + $0x5e0] sm:$0xff] }
  0x4c   : > { %2485 = vmatprep.subr.bf16.mxu1 %v2484_v2  ;;  %v2536_v2 = vpack.c.bf16 %v478_v59, %v477_v58  ;;  %v482_v19 = vld [vmem:[%s4050_s1 + $0x5e8] sm:$0xff]  ;;  %v433_v25 = vld [vmem:[%s4050_s1 + $0x460] sm:$0xff]  ;;  %v451_v30 = vld [vmem:[%s4050_s1 + $0x4f0] sm:$0xff] }
  0x4d   : > { %v434_v26 = vld [vmem:[%s4050_s1 + $0x468] sm:$0xff]  ;;  %v465_v27 = vld [vmem:[%s4050_s1 + $0x560] sm:$0xff]  ;;  %v452_v31 = vld [vmem:[%s4050_s1 + $0x4f8] sm:$0xff] }
  0x4e   : > { %2455 = vmatpush3.bf16.msra.mxu0 %v2454_v8  ;;  %v2506_v8 = vpack.c.bf16 %v430_v0, %v429_v63  ;;  %v466_v29 = vld [vmem:[%s4050_s1 + $0x568] sm:$0xff]  ;;  %v483_v32 = vld [vmem:[%s4050_s1 + $0x5f0] sm:$0xff]  ;;  %v484_v33 = vld [vmem:[%s4050_s1 + $0x5f8] sm:$0xff] }
  0x4f   : > { %2487 = vmatpush3.bf16.msra.mxu1 %v2486_v9  ;;  %2489 = vmatprep.subr.bf16.mxu0 %v2488_v10  ;;  %v2538_v9 = vpack.c.bf16 %v462_v3, %v461_v1  ;;  %v2508_v10 = vpack.c.bf16 %v448_v5, %v447_v4  ;;  %v435_v39 = vld [vmem:[%s4050_s1 + $0x470] sm:$0xff]  ;;  %v436_v40 = vld [vmem:[%s4050_s1 + $0x478] sm:$0xff]  ;;  %v501_v44 = vld [vmem:[%s4050_s1 + $0x680] sm:$0xff] }
  0x50   : > { %2521 = vmatprep.subr.bf16.mxu1 %v2520_v14  ;;  %v2540_v14 = vpack.c.bf16 %v480_v7, %v479_v6  ;;  %v467_v41 = vld [vmem:[%s4050_s1 + $0x570] sm:$0xff]  ;;  %v468_v43 = vld [vmem:[%s4050_s1 + $0x578] sm:$0xff]  ;;  %v502_v45 = vld [vmem:[%s4050_s1 + $0x688] sm:$0xff] }
  0x51   : > { %754 = vmatmul.mubr.f32.vlgmr.msra.gmra.mrb[2].mxu0 %v3333_v20  ;;  %v533_v46 = vld [vmem:[%s4050_s1 + $0x780] sm:$0xff]  ;;  %v534_v47 = vld [vmem:[%s4050_s1 + $0x788] sm:$0xff]  ;;  %v503_v56 = vld [vmem:[%s4050_s1 + $0x690] sm:$0xff] }
  0x52   : > { %2491 = vmatpush3.bf16.msra.mxu0 %v2490_v21  ;;  %824 = vmatmul.mubr.f32.vlgmr.msra.gmra.mrb[2].mxu1 %v3336_v22  ;;  %v2510_v21 = vpack.c.bf16 %v432_v12, %v431_v11  ;;  %v485_v51 = vld [vmem:[%s4050_s1 + $0x600] sm:$0xff]  ;;  %v486_v52 = vld [vmem:[%s4050_s1 + $0x608] sm:$0xff]  ;;  %v504_v57 = vld [vmem:[%s4050_s1 + $0x698] sm:$0xff] }
  0x53   : > { %2523 = vmatpush3.bf16.msra.mxu1 %v2522_v23  ;;  %2493 = vmatprep.subr.bf16.mxu0 %v2492_v24  ;;  %v2542_v23 = vpack.c.bf16 %v464_v15, %v463_v13  ;;  %v2512_v24 = vpack.c.bf16 %v450_v17, %v449_v16  ;;  %v517_v53 = vld [vmem:[%s4050_s1 + $0x700] sm:$0xff]  ;;  %v518_v55 = vld [vmem:[%s4050_s1 + $0x708] sm:$0xff]  ;;  %v535_v58 = vld [vmem:[%s4050_s1 + $0x790] sm:$0xff]  ;;  %v2556_v0 = vpack.c.bf16 %v504_v57, %v503_v56 }
  0x54   : > { %2525 = vmatprep.subr.bf16.mxu1 %v2524_v28  ;;  %893 = vmatprep.mubr.f32.mxu0 %v3364_v34  ;;  %v2544_v28 = vpack.c.bf16 %v482_v19, %v481_v18  ;;  %v536_v59 = vld [vmem:[%s4050_s1 + $0x798] sm:$0xff]  ;;  %v2586_v63 = vpack.c.bf16 %v518_v55, %v517_v53  ;;  %v487_v1 = vld [vmem:[%s4050_s1 + $0x610] sm:$0xff]  ;;  %v505_v6 = vld [vmem:[%s4050_s1 + $0x6a0] sm:$0xff] }
  0x55   : > { %963 = vmatprep.mubr.f32.mxu1 %v3368_v36  ;;  %v519_v3 = vld [vmem:[%s4050_s1 + $0x710] sm:$0xff]  ;;  %v2588_v4 = vpack.c.bf16 %v536_v59, %v535_v58  ;;  %v520_v5 = vld [vmem:[%s4050_s1 + $0x718] sm:$0xff]  ;;  %v506_v7 = vld [vmem:[%s4050_s1 + $0x6a8] sm:$0xff] }
  0x56   : > { %2495 = vmatpush3.bf16.msra.mxu0 %v2494_v35  ;;  %v2514_v35 = vpack.c.bf16 %v434_v26, %v433_v25  ;;  %v3576_v12 = vld [vmem:[%s3054_s21 + $0x78] sm:$0xff]  ;;  %v2590_v13 = vpack.c.bf16 %v520_v5, %v519_v3  ;;  %v489_v15 = vld [vmem:[%s4050_s1 + $0x620] sm:$0xff]  ;;  %v490_v16 = vld [vmem:[%s4050_s1 + $0x628] sm:$0xff] }
  0x57   : > { %2527 = vmatpush3.bf16.msra.mxu1 %v2526_v37  ;;  %2497 = vmatprep.subr.bf16.mxu0 %v2496_v38  ;;  %v2546_v37 = vpack.c.bf16 %v466_v29, %v465_v27  ;;  %v2516_v38 = vpack.c.bf16 %v452_v31, %v451_v30  ;;  %v521_v17 = vld [vmem:[%s4050_s1 + $0x720] sm:$0xff]  ;;  %v522_v19 = vld [vmem:[%s4050_s1 + $0x728] sm:$0xff]  ;;  %v540_v25 = vld [vmem:[%s4050_s1 + $0x7b8] sm:$0xff]  ;;  %v2562_v26 = vpack.c.bf16 %v490_v16, %v489_v15 }
  0x58   : > { %2529 = vmatprep.subr.bf16.mxu1 %v2528_v42  ;;  %v2548_v42 = vpack.c.bf16 %v484_v33, %v483_v32  ;;  %v2594_v27 = vpack.c.bf16 %v522_v19, %v521_v17  ;;  %v491_v29 = vld [vmem:[%s4050_s1 + $0x630] sm:$0xff]  ;;  %v492_v30 = vld [vmem:[%s4050_s1 + $0x638] sm:$0xff]  ;;  %v497_v5 = vld [vmem:[%s4050_s1 + $0x660] sm:$0xff] }
  0x59   : > { %v523_v31 = vld [vmem:[%s4050_s1 + $0x730] sm:$0xff]  ;;  %v524_v33 = vld [vmem:[%s4050_s1 + $0x738] sm:$0xff] }
  0x5a   : > { %2499 = vmatpush3.bf16.msra.mxu0 %v2498_v48  ;;  %v2518_v48 = vpack.c.bf16 %v436_v40, %v435_v39  ;;  %v542_v39 = vld [vmem:[%s4050_s1 + $0x7c8] sm:$0xff]  ;;  %v2566_v40 = vpack.c.bf16 %v492_v30, %v491_v29  ;;  %v495_v55 = vld [vmem:[%s4050_s1 + $0x650] sm:$0xff]  ;;  %v496_v56 = vld [vmem:[%s4050_s1 + $0x658] sm:$0xff] }
  0x5b   : > { %2531 = vmatpush3.bf16.msra.mxu1 %v2530_v49  ;;  %2501 = vmatprep.subr.bf16.mxu0 %v2500_v50  ;;  %v2550_v49 = vpack.c.bf16 %v468_v43, %v467_v41  ;;  %v2552_v50 = vpack.c.bf16 %v502_v45, %v501_v44  ;;  %v2598_v41 = vpack.c.bf16 %v524_v33, %v523_v31  ;;  %v493_v43 = vld [vmem:[%s4050_s1 + $0x640] sm:$0xff]  ;;  %v494_v44 = vld [vmem:[%s4050_s1 + $0x648] sm:$0xff]  ;;  %v527_v57 = vld [vmem:[%s4050_s1 + $0x750] sm:$0xff]  ;;  %v2802_v33 = vmov 0.0|0.0  }
  0x5c   : > { %2533 = vmatprep.subr.bf16.mxu1 %v2532_v54  ;;  %v2584_v54 = vpack.c.bf16 %v534_v47, %v533_v46  ;;  %v525_v45 = vld [vmem:[%s4050_s1 + $0x740] sm:$0xff]  ;;  %v526_v47 = vld [vmem:[%s4050_s1 + $0x748] sm:$0xff]  ;;  %v528_v59 = vld [vmem:[%s4050_s1 + $0x758] sm:$0xff] }
  0x5d   : > { %v2602_v53 = vpack.c.bf16 %v526_v47, %v525_v45  ;;  %v2606_v3 = vpack.c.bf16 %v528_v59, %v527_v57  ;;  %v548_v15 = vld [vmem:[%s4050_s1 + $0x7f8] sm:$0xff]  ;;  %v499_v19 = vld [vmem:[%s4050_s1 + $0x670] sm:$0xff]  ;;  %v1110_v30 = vld [vmem:[%s4051_s2] sm:$0xff] }
  0x5e   : > { %2503 = vmatpush3.bf16.msra.mxu0 %v2502_v60  ;;  %v3541_v60 = vld [vmem:[%s3054_s21 + $0x40] sm:$0xff]  ;;  %v3716_v29 = vld [vmem:[%s3054_s21 + $0x70] sm:$0xff]  ;;  %v1111_v31 = vld [vmem:[%s4051_s2 + $0x8] sm:$0xff] }
  0x5f   : > { %2535 = vmatpush3.bf16.msra.mxu1 %v2534_v61  ;;  %2505 = vmatprep.subr.bf16.mxu0 %v2504_v62  ;;  %v2554_v61 = vpack.c.bf16 %v486_v52, %v485_v51  ;;  %v3544_v62 = vld [vmem:[%s3054_s21 + $0x50] sm:$0xff]  ;;  %v544_v51 = vld [vmem:[%s4050_s1 + $0x7d8] sm:$0xff]  ;;  %v2570_v52 = vpack.c.bf16 %v494_v44, %v493_v43 }
  0x60   : > { %2537 = vmatprep.subr.bf16.mxu1 %v2536_v2  ;;  %v488_v2 = vld [vmem:[%s4050_s1 + $0x618] sm:$0xff] }
  0x61   : > { %v2558_v11 = vpack.c.bf16 %v488_v2, %v487_v1  ;;  %v546_v1 = vld [vmem:[%s4050_s1 + $0x7e8] sm:$0xff]  ;;  %v2574_v2 = vpack.c.bf16 %v496_v56, %v495_v55 }
  0x62   : > { %2507 = vmatpush3.bf16.msra.mxu0 %v2506_v8  ;;  %v537_v8 = vld [vmem:[%s4050_s1 + $0x7a0] sm:$0xff] }
  0x63   : > { %2539 = vmatpush3.bf16.msra.mxu1 %v2538_v9  ;;  %2509 = vmatprep.subr.bf16.mxu0 %v2508_v10  ;;  %v538_v9 = vld [vmem:[%s4050_s1 + $0x7a8] sm:$0xff] }
  0x64   : > { %2541 = vmatprep.subr.bf16.mxu1 %v2540_v14  ;;  %v3572_v10 = vld [vmem:[%s3054_s21 + $0x68] sm:$0xff]  ;;  %v2560_v14 = vpack.c.bf16 %v506_v7, %v505_v6  ;;  %v2592_v18 = vpack.c.bf16 %v538_v9, %v537_v8  ;;  %v529_v7 = vld [vmem:[%s4050_s1 + $0x760] sm:$0xff] }
  0x65   : > { %v498_v6 = vld [vmem:[%s4050_s1 + $0x668] sm:$0xff] }
  0x66   : > { %2511 = vmatpush3.bf16.msra.mxu0 %v2510_v21  ;;  %v507_v21 = vld [vmem:[%s4050_s1 + $0x6b0] sm:$0xff]  ;;  %v530_v9 = vld [vmem:[%s4050_s1 + $0x768] sm:$0xff]  ;;  %v2578_v16 = vpack.c.bf16 %v498_v6, %v497_v5 }
  0x67   : > { %2543 = vmatpush3.bf16.msra.mxu1 %v2542_v23  ;;  %2513 = vmatprep.subr.bf16.mxu0 %v2512_v24  ;;  %v508_v23 = vld [vmem:[%s4050_s1 + $0x6b8] sm:$0xff]  ;;  %v539_v24 = vld [vmem:[%s4050_s1 + $0x7b0] sm:$0xff]  ;;  %v2610_v17 = vpack.c.bf16 %v530_v9, %v529_v7 }
  0x68   : > { %2545 = vmatprep.subr.bf16.mxu1 %v2544_v28  ;;  %v2564_v28 = vpack.c.bf16 %v508_v23, %v507_v21  ;;  %v2596_v32 = vpack.c.bf16 %v540_v25, %v539_v24  ;;  %v500_v21 = vld [vmem:[%s4050_s1 + $0x678] sm:$0xff]  ;;  %v531_v24 = vld [vmem:[%s4050_s1 + $0x770] sm:$0xff] }
  0x69   : > { %v532_v25 = vld [vmem:[%s4050_s1 + $0x778] sm:$0xff] }
  0x6a   : > { %2515 = vmatpush3.bf16.msra.mxu0 %v2514_v35  ;;  %v509_v35 = vld [vmem:[%s4050_s1 + $0x6c0] sm:$0xff] }
  0x6b   : > { %2547 = vmatpush3.bf16.msra.mxu1 %v2546_v37  ;;  %2517 = vmatprep.subr.bf16.mxu0 %v2516_v38  ;;  %v510_v37 = vld [vmem:[%s4050_s1 + $0x6c8] sm:$0xff]  ;;  %v541_v38 = vld [vmem:[%s4050_s1 + $0x7c0] sm:$0xff] }
  0x6c   : > { %2549 = vmatprep.subr.bf16.mxu1 %v2548_v42  ;;  %v2568_v42 = vpack.c.bf16 %v510_v37, %v509_v35  ;;  %v2600_v46 = vpack.c.bf16 %v542_v39, %v541_v38  ;;  %v1112_v35 = vld [vmem:[%s4051_s2 + $0x10] sm:$0xff]  ;;  %v1113_v37 = vld [vmem:[%s4051_s2 + $0x18] sm:$0xff]  ;;  %v2804_v39 = vmov 0.0  }
  0x6d   : > { %v2620_v38 = vpack.c.bf16 %v1113_v37, %v1112_v35  ;;  %v1337_v37 = vld [vmem:[%s4055_s6 + $0x188] sm:$0xff] }
  0x6e   : > { %2519 = vmatpush3.bf16.msra.mxu0 %v2518_v48  ;;  %v511_v48 = vld [vmem:[%s4050_s1 + $0x6d0] sm:$0xff] }
  0x6f   : > { %2551 = vmatpush3.bf16.msra.mxu1 %v2550_v49  ;;  %2553 = vmatprep.subr.bf16.mxu0 %v2552_v50  ;;  %v512_v49 = vld [vmem:[%s4050_s1 + $0x6d8] sm:$0xff]  ;;  %v543_v50 = vld [vmem:[%s4050_s1 + $0x7d0] sm:$0xff] }
  0x70   : > { %2585 = vmatprep.subr.bf16.mxu1 %v2584_v54  ;;  %v2572_v54 = vpack.c.bf16 %v512_v49, %v511_v48  ;;  %v2604_v58 = vpack.c.bf16 %v544_v51, %v543_v50 }
  0x71   : > { %894 = vmatmul.mubr.f32.vlgmr.msra.gmra.mrb[4].mxu0 %v3541_v60 }
  0x72   : > { %2555 = vmatpush3.bf16.msra.mxu0 %v2554_v61  ;;  %964 = vmatmul.mubr.f32.vlgmr.msra.gmra.mrb[4].mxu1 %v3544_v62  ;;  %v513_v61 = vld [vmem:[%s4050_s1 + $0x6e0] sm:$0xff] }
  0x73   : > { %2587 = vmatpush3.bf16.msra.mxu1 %v2586_v63  ;;  %2557 = vmatprep.subr.bf16.mxu0 %v2556_v0  ;;  %v514_v63 = vld [vmem:[%s4050_s1 + $0x6e8] sm:$0xff]  ;;  %v545_v0 = vld [vmem:[%s4050_s1 + $0x7e0] sm:$0xff] }
  0x74   : > { %2589 = vmatprep.subr.bf16.mxu1 %v2588_v4  ;;  %1033 = vmatprep.mubr.f32.mxu0 %v3572_v10  ;;  %v2576_v4 = vpack.c.bf16 %v514_v63, %v513_v61  ;;  %v2608_v8 = vpack.c.bf16 %v546_v1, %v545_v0 }
  0x75   : > { %1103 = vmatprep.mubr.f32.mxu1 %v3576_v12 }
  0x76   : > { %2559 = vmatpush3.bf16.msra.mxu0 %v2558_v11  ;;  %v515_v11 = vld [vmem:[%s4050_s1 + $0x6f0] sm:$0xff] }
  0x77   : > { %2591 = vmatpush3.bf16.msra.mxu1 %v2590_v13  ;;  %2561 = vmatprep.subr.bf16.mxu0 %v2560_v14  ;;  %v516_v13 = vld [vmem:[%s4050_s1 + $0x6f8] sm:$0xff]  ;;  %v547_v14 = vld [vmem:[%s4050_s1 + $0x7f0] sm:$0xff] }
  0x78   : > { %2593 = vmatprep.subr.bf16.mxu1 %v2592_v18  ;;  %v2580_v18 = vpack.c.bf16 %v516_v13, %v515_v11  ;;  %v2612_v23 = vpack.c.bf16 %v548_v15, %v547_v14  ;;  %v1196_v11 = vld [vmem:[%s4053_s4] sm:$0xf] }
  0x79   : > { %v2036_v13 = vld [vmem:[%s4052_s3] ss:$0 sm:$0xff] }
  0x7a   : > { %2563 = vmatpush3.bf16.msra.mxu0 %v2562_v26  ;;  %v2582_v26 = vpack.c.bf16 %v500_v21, %v499_v19  ;;  %v1305_v19 = vld [vmem:[%s4055_s6 + $0x88] sm:$0xff]  ;;  %v1291_v21 = vld [vmem:[%s4055_s6 + $0x18] sm:$0xff] }
  0x7b   : > { %2595 = vmatpush3.bf16.msra.mxu1 %v2594_v27  ;;  %2565 = vmatprep.subr.bf16.mxu0 %v2564_v28  ;;  %v2614_v27 = vpack.c.bf16 %v532_v25, %v531_v24  ;;  %v3713_v28 = vld [vmem:[%s3054_s21 + $0x60] sm:$0xff]  ;;  %v1307_v24 = vld [vmem:[%s4055_s6 + $0x98] sm:$0xff] }
  0x7c   : > { %2597 = vmatprep.subr.bf16.mxu1 %v2596_v32  ;;  %v2617_v32 = vpack.c.bf16 %v1111_v31, %v1110_v30  ;;  %v1288_v25 = vld [vmem:[%s4055_s6] sm:$0xff]  ;;  %v1290_v31 = vld [vmem:[%s4055_s6 + $0x10] sm:$0xff] }
  0x7e   : > { %2567 = vmatpush3.bf16.msra.mxu0 %v2566_v40 }
  0x7f   : > { %2599 = vmatpush3.bf16.msra.mxu1 %v2598_v41  ;;  %2569 = vmatprep.subr.bf16.mxu0 %v2568_v42 }
  0x80   : > { %2601 = vmatprep.subr.bf16.mxu1 %v2600_v46 }
  0x82   : > { %2571 = vmatpush3.bf16.msra.mxu0 %v2570_v52 }
  0x83   : > { %2603 = vmatpush3.bf16.msra.mxu1 %v2602_v53  ;;  %2573 = vmatprep.subr.bf16.mxu0 %v2572_v54 }
  0x84   : > { %2605 = vmatprep.subr.bf16.mxu1 %v2604_v58 }
  0x86   : > { %2575 = vmatpush3.bf16.msra.mxu0 %v2574_v2 }
  0x87   : > { %2607 = vmatpush3.bf16.msra.mxu1 %v2606_v3  ;;  %2577 = vmatprep.subr.bf16.mxu0 %v2576_v4 }
  0x88   : > { %2609 = vmatprep.subr.bf16.mxu1 %v2608_v8 }
  0x8a   : > { %2579 = vmatpush3.bf16.msra.mxu0 %v2578_v16 }
  0x8b   : > { %2611 = vmatpush3.bf16.msra.mxu1 %v2610_v17  ;;  %2581 = vmatprep.subr.bf16.mxu0 %v2580_v18  ;;  %v1289_v18 = vld [vmem:[%s4055_s6 + $0x8] sm:$0xff] }
  0x8c   : > { %2613 = vmatprep.subr.bf16.mxu1 %v2612_v23  ;;  %v2622_v23 = vpack.c.bf16 %v1305_v19, %v1289_v18  ;;  %v1297_v18 = vld [vmem:[%s4055_s6 + $0x48] sm:$0xff] }
  0x8e   : > { %2583 = vmatpush3.bf16.msra.mxu0 %v2582_v26  ;;  %v1304_v26 = vld [vmem:[%s4055_s6 + $0x80] sm:$0xff] }
  0x8f   : > { %2615 = vmatpush3.bf16.msra.mxu1 %v2614_v27  ;;  %2616 = vmatprep.subr.bf16.mxu0 %v2802_v33  ;;  %v2630_v27 = vpack.c.bf16 %v1307_v24, %v1291_v21  ;;  %v2624_v30 = vpack.c.bf16 %v1304_v26, %v1288_v25  ;;  %v1313_v21 = vld [vmem:[%s4055_s6 + $0xc8] sm:$0xff]  ;;  %v1315_v24 = vld [vmem:[%s4055_s6 + $0xd8] sm:$0xff] }
  0x90   : > { %2355 = vmatprep.subr.mxu1 %v2804_v39 }
  0x91   : > { %1034 = vmatmul.mubr.f32.vlgmr.msra.gmra.mrb[6].mxu0 %v3713_v28 }
  0x92   : > { %1104 = vmatmul.mubr.f32.vlgmr.msra.gmra.mrb[6].mxu1 %v3716_v29  ;;  %2618 = vmatpush3.bf16.msra.mxu0 %v2617_v32  ;;  %v1306_v32 = vld [vmem:[%s4055_s6 + $0x90] sm:$0xff] }
  0x93   : > { %2619 = vmatprep.subr.bf16.mxu0 %v2802_v33  ;;  %2352 = vmatprep.mubr.msk.f32.mxu0 %vm2803_vm0, %v2804_v39  ;;  %v1321_v33 = vld [vmem:[%s4055_s6 + $0x108] sm:$0xff]  ;;  %v2632_v35 = vpack.c.bf16 %v1306_v32, %v1290_v31  ;;  %v2654_v31 = vpack.c.bf16 %v1313_v21, %v1297_v18  ;;  %v2732_v18 = vld [vmem:[%s3054_s21] sm:$0xff] }
  0x94   : > { %2357 = vmatprep.mubr.msk.f32.mxu1 %vm2803_vm0, %v2804_v39  ;;  %2356 = vmatpush3.msk.msra.mxu1 %vm1208_vm2, %v1196_v11  ;;  %v1324_v11 = vld [vmem:[%s4055_s6 + $0x120] sm:$0xff] }
  0x95   : > { %2623 = vmatprep.subr.bf16.mxu1 %v2622_v23  ;;  %v1299_v23 = vld [vmem:[%s4055_s6 + $0x58] sm:$0xff] }
  0x96   : > { %2621 = vmatpush3.bf16.msra.mxu0 %v2620_v38  ;;  %v1323_v38 = vld [vmem:[%s4055_s6 + $0x118] sm:$0xff]  ;;  %v2662_v32 = vpack.c.bf16 %v1315_v24, %v1299_v23  ;;  %v2733_v23 = vld [vmem:[%s3054_s21 + $0x10] sm:$0xff] }
  0x97   : > { %2631 = vmatprep.subr.bf16.mxu0 %v2630_v27  ;;  %v1296_v27 = vld [vmem:[%s4055_s6 + $0x40] sm:$0xff] }
 0x104   : > { %v2089_v40 = vpop.f32.mrb[0].mxu0 }
 0x105   : > { %v2124_v41 = vpop.f32.mrb[0].mxu1  ;;  %v2090_v42 = vpop.f32.mrb[1].mxu0 }
 0x106   : > { %v2091_v43 = vadd.f32 %v2090_v42, %v2089_v40  ;;  %v2125_v44 = vpop.f32.mrb[1].mxu1  ;;  %v1339_v40 = vld [vmem:[%s4055_s6 + $0x198] sm:$0xff] }
 0x107   : > { %v2126_v45 = vadd.f32 %v2125_v44, %v2124_v41  ;;  %v2626_v41 = vpack.c.bf16 %v1337_v37, %v1321_v33  ;;  %v2634_v42 = vpack.c.bf16 %v1339_v40, %v1323_v38  ;;  %v1336_v44 = vld [vmem:[%s4055_s6 + $0x180] sm:$0xff]  ;;  %v1298_v33 = vld [vmem:[%s4055_s6 + $0x50] sm:$0xff]  ;;  %v1329_v37 = vld [vmem:[%s4055_s6 + $0x148] sm:$0xff] }
 0x108   : > { %v1345_v38 = vld [vmem:[%s4055_s6 + $0x1c8] sm:$0xff]  ;;  %v1331_v40 = vld [vmem:[%s4055_s6 + $0x158] sm:$0xff] }
 0x109   : > { %v686_v46 = vadd.f32 %v2126_v45, %v2091_v43  ;;  %v1320_v43 = vld [vmem:[%s4055_s6 + $0x100] sm:$0xff]  ;;  %v1322_v45 = vld [vmem:[%s4055_s6 + $0x110] sm:$0xff] }
 0x124   : > { %v2159_v47 = vpop.f32.mrb[2].mxu0 }
 0x125   : > { %v2160_v48 = vpop.f32.mrb[3].mxu0  ;;  %v2194_v49 = vpop.f32.mrb[2].mxu1 }
 0x126   : > { %v2161_v50 = vadd.f32 %v2160_v48, %v2159_v47  ;;  %v2195_v51 = vpop.f32.mrb[3].mxu1  ;;  %v1338_v47 = vld [vmem:[%s4055_s6 + $0x190] sm:$0xff]  ;;  %v1293_v48 = vld [vmem:[%s4055_s6 + $0x28] sm:$0xff] }
 0x127   : > { %v2196_v52 = vadd.f32 %v2195_v51, %v2194_v49  ;;  %v1309_v49 = vld [vmem:[%s4055_s6 + $0xa8] sm:$0xff] }
 0x128   : > { %v756_v53 = vadd.f32 %v2161_v50, %v686_v46  ;;  %v2628_v46 = vpack.c.bf16 %v1336_v44, %v1320_v43  ;;  %v2636_v50 = vpack.c.bf16 %v1338_v47, %v1322_v45  ;;  %v2638_v51 = vpack.c.bf16 %v1309_v49, %v1293_v48  ;;  %v1328_v44 = vld [vmem:[%s4055_s6 + $0x140] sm:$0xff]  ;;  %v1330_v48 = vld [vmem:[%s4055_s6 + $0x150] sm:$0xff] }
 0x129   : > { %v1344_v45 = vld [vmem:[%s4055_s6 + $0x1c0] sm:$0xff]  ;;  %v1346_v49 = vld [vmem:[%s4055_s6 + $0x1d0] sm:$0xff] }
 0x12a   : > { %v826_v54 = vadd.f32 %v2196_v52, %v756_v53  ;;  %v1295_v52 = vld [vmem:[%s4055_s6 + $0x38] sm:$0xff] }
 0x12b   : > { %v1311_v53 = vld [vmem:[%s4055_s6 + $0xb8] sm:$0xff] }
 0x144   : > { %v2229_v55 = vpop.f32.mrb[4].mxu0 }
 0x145   : > { %v2230_v56 = vpop.f32.mrb[5].mxu0  ;;  %v2264_v57 = vpop.f32.mrb[4].mxu1 }
 0x146   : > { %v2231_v58 = vadd.f32 %v2230_v56, %v2229_v55  ;;  %v2265_v59 = vpop.f32.mrb[5].mxu1  ;;  %v2038_v55 = vld [vmem:[%s4054_s5] ss:$0 sm:$0xff] }
 0x147   : > { %v2266_v61 = vadd.f32 %v2265_v59, %v2264_v57 }
 0x148   : > { %v896_v63 = vadd.f32 %v2231_v58, %v826_v54  ;;  %v2646_v54 = vpack.c.bf16 %v1311_v53, %v1295_v52  ;;  %v1303_v52 = vld [vmem:[%s4055_s6 + $0x78] sm:$0xff] }
 0x149   : > { %v1319_v53 = vld [vmem:[%s4055_s6 + $0xf8] sm:$0xff] }
 0x14a   : > { %v966_v0 = vadd.f32 %v2266_v61, %v896_v63 }
 0x164   : > { %v2299_v1 = vpop.f32.mrb[6].mxu0 }
 0x165   : > { %v2300_v2 = vpop.f32.mrb[7].mxu0  ;;  %v2334_v3 = vpop.f32.mrb[6].mxu1 }
 0x166   : > { %v2301_v4 = vadd.f32 %v2300_v2, %v2299_v1  ;;  %v2335_v5 = vpop.f32.mrb[7].mxu1  ;;  %v1308_v1 = vld [vmem:[%s4055_s6 + $0xa0] sm:$0xff]  ;;  %v1294_v2 = vld [vmem:[%s4055_s6 + $0x30] sm:$0xff] }
 0x167   : > { %v2336_v6 = vadd.f32 %v2335_v5, %v2334_v3  ;;  %v1310_v3 = vld [vmem:[%s4055_s6 + $0xb0] sm:$0xff]  ;;  %v1341_v5 = vld [vmem:[%s4055_s6 + $0x1a8] sm:$0xff] }
 0x168   : > { %v1036_v7 = vadd.f32 %v2301_v4, %v966_v0  ;;  %v1292_v0 = vld [vmem:[%s4055_s6 + $0x20] sm:$0xff]  ;;  %v1325_v4 = vld [vmem:[%s4055_s6 + $0x128] sm:$0xff] }
 0x16a   : > { %v1106_v8 = vadd.f32 %v2336_v6, %v1036_v7  ;;  %v1327_v6 = vld [vmem:[%s4055_s6 + $0x138] sm:$0xff] }
 0x16b   : > { %v1343_v7 = vld [vmem:[%s4055_s6 + $0x1b8] sm:$0xff] }
 0x16c   : > { %v1109_v9 = vmul.f32 0.015625, %v1106_v8  ;;  %v2640_v8 = vpack.c.bf16 %v1308_v1, %v1292_v0  ;;  %v1333_v0 = vld [vmem:[%s4055_s6 + $0x168] sm:$0xff] }
 0x16d   : > { %v1349_v1 = vld [vmem:[%s4055_s6 + $0x1e8] sm:$0xff] }
 0x16e   : > { %2353 = vmatmul.mubr.msk.f32.vlgmr.msra.gmra.mrb[8].mxu0 %vm1121_vm1, %v1109_v9  ;;  %v2648_v9 = vpack.c.bf16 %v1310_v3, %v1294_v2  ;;  %v1335_v2 = vld [vmem:[%s4055_s6 + $0x178] sm:$0xff] }
 0x16f   : > { %1490 = vmatprep.mubr.f32.mxu0 %v2804_v39  ;;  %2633 = vmatpush1.bf16.msra.mxu0 %v2632_v35  ;;  %v1314_v35 = vld [vmem:[%s4055_s6 + $0xd0] sm:$0xff]  ;;  %v1351_v3 = vld [vmem:[%s4055_s6 + $0x1f8] sm:$0xff] }
 0x170   : > { %2635 = vmatprep.subr.bf16.mxu0 %v2634_v42  ;;  %v2664_v43 = vpack.c.bf16 %v1314_v35, %v1298_v33 }
 0x173   : > { %2637 = vmatpush1.bf16.msra.mxu0 %v2636_v50  ;;  %v1301_v50 = vld [vmem:[%s4055_s6 + $0x68] sm:$0xff] }
 0x174   : > { %2647 = vmatprep.subr.bf16.mxu0 %v2646_v54  ;;  %v2660_v54 = vpack.c.bf16 %v1344_v45, %v1328_v44 }
 0x241   : > { %v1191_v14 = vpop.f32.mrb[8].mxu0 }
 0x242   : > { %v1192_v15 = vadd.f32 %v2036_v13, %v1191_v14  ;;  %v2354_v16 = vpop.f32.mrb[9].mxu0  ;;  %v1340_v13 = vld [vmem:[%s4055_s6 + $0x1a0] sm:$0xff]  ;;  %v2642_v14 = vpack.c.bf16 %v1341_v5, %v1325_v4 }
 0x243   : > { %v1326_v16 = vld [vmem:[%s4055_s6 + $0x130] sm:$0xff]  ;;  %v2644_v25 = vpack.c.bf16 %v1340_v13, %v1324_v11 }
 0x244   : > { %v1195_v17 = vmax.f32 %v1192_v15, 0.0  ;;  %v2650_v15 = vpack.c.bf16 %v1343_v7, %v1327_v6  ;;  %v1332_v6 = vld [vmem:[%s4055_s6 + $0x160] sm:$0xff]  ;;  %v2674_v7 = vpack.c.bf16 %v1349_v1, %v1333_v0  ;;  %v1334_v11 = vld [vmem:[%s4055_s6 + $0x170] sm:$0xff] }
 0x245   : > { %v1350_v13 = vld [vmem:[%s4055_s6 + $0x1f0] sm:$0xff] }
 0x246   : > { %2358 = vmatmul.mubr.msk.f32.vlgmr.msra.gmra.mrb[8].mxu1 %vm1204_vm3, %v1195_v17  ;;  %v1342_v17 = vld [vmem:[%s4055_s6 + $0x1b0] sm:$0xff] }
 0x247   : > { %1419 = vmatprep.mubr.f32.mxu1 %v2804_v39  ;;  %2625 = vmatpush1.bf16.msra.mxu1 %v2624_v30  ;;  %v2652_v26 = vpack.c.bf16 %v1342_v17, %v1326_v16  ;;  %v1312_v30 = vld [vmem:[%s4055_s6 + $0xc0] sm:$0xff] }
 0x248   : > { %2627 = vmatprep.subr.bf16.mxu1 %v2626_v41  ;;  %v1347_v41 = vld [vmem:[%s4055_s6 + $0x1d8] sm:$0xff]  ;;  %v2656_v42 = vpack.c.bf16 %v1312_v30, %v1296_v27 }
 0x249   : > { %v2666_v47 = vpack.c.bf16 %v1347_v41, %v1331_v40  ;;  %v2735_v30 = vld [vmem:[%s3054_s21 + $0x18] sm:$0xff]  ;;  %v2736_v40 = vld [vmem:[%s3054_s21 + $0x28] sm:$0xff] }
 0x24b   : > { %2629 = vmatpush1.bf16.msra.mxu1 %v2628_v46  ;;  %v2658_v46 = vpack.c.bf16 %v1345_v38, %v1329_v37 }
 0x24c   : > { %2639 = vmatprep.subr.bf16.mxu1 %v2638_v51  ;;  %v1317_v51 = vld [vmem:[%s4055_s6 + $0xe8] sm:$0xff] }
 0x319   : > { %v1278_v56 = vpop.f32.mrb[8].mxu1 }
 0x31a   : > { %v1279_v57 = vadd.f32 %v2038_v55, %v1278_v56  ;;  %v2359_v58 = vpop.f32.mrb[9].mxu1  ;;  %v2668_v55 = vpack.c.bf16 %v1346_v49, %v1330_v48  ;;  %v1300_v56 = vld [vmem:[%s4055_s6 + $0x60] sm:$0xff] }
 0x31b   : > { %v2670_v58 = vpack.c.bf16 %v1317_v51, %v1301_v50 }
 0x31c   : > { %v2041_v59 = vmul.f32 -1.442695, %v1279_v57  ;;  %v1316_v57 = vld [vmem:[%s4055_s6 + $0xe0] sm:$0xff] }
 0x31d   : > { %v2672_v4 = vpack.c.bf16 %v1316_v57, %v1300_v56 }
 0x31e   : > { %2728 = vpow2.f32 %v2041_v59  ;;  %v2678_v59 = vpack.c.bf16 %v1319_v53, %v1303_v52 }
 0x328   : > { %v2729_v61 = vpop.eup %2728 }
 0x329   : > { %v1285_v63 = vadd.f32 1.0, %v2729_v61  ;;  %v1302_v61 = vld [vmem:[%s4055_s6 + $0x70] sm:$0xff] }
 0x32b   : > { %2730 = vrcp.f32 %v1285_v63  ;;  %v1318_v63 = vld [vmem:[%s4055_s6 + $0xf0] sm:$0xff] }
 0x32c   : > { %v2680_v5 = vpack.c.bf16 %v1318_v63, %v1302_v61 }
 0x335   : > { %v3846_v19 = vpop.eup %2730 }
 0x336   : > { %2042 = vmatmul.mubr.msk.f32.vlgmr.msra.gmra.mrb[10].mxu1 %vm1121_vm1, %v3846_v19  ;;  %2043 = vmatmul.mubr.msk.f32.vlgmr.msra.gmra.mrb[10].mxu0 %vm1121_vm1, %v3846_v19 }
 0x337   : > { %2641 = vmatpush1.bf16.msra.mxu1 %v2640_v8  ;;  %2649 = vmatpush1.bf16.msra.mxu0 %v2648_v9  ;;  %v2682_v8 = vpack.c.bf16 %v1351_v3, %v1335_v2  ;;  %v1348_v9 = vld [vmem:[%s4055_s6 + $0x1e0] sm:$0xff] }
 0x338   : > { %2643 = vmatprep.subr.bf16.mxu1 %v2642_v14  ;;  %2651 = vmatprep.subr.bf16.mxu0 %v2650_v15  ;;  %v2676_v14 = vpack.c.bf16 %v1348_v9, %v1332_v6  ;;  %v2684_v15 = vpack.c.bf16 %v1350_v13, %v1334_v11 }
 0x339   : > { %1561 = vmatprep.mubr.f32.mxu1 %v2804_v39  ;;  %1632 = vmatprep.mubr.f32.mxu0 %v2804_v39 }
 0x33b   : > { %2645 = vmatpush1.bf16.msra.mxu1 %v2644_v25  ;;  %2653 = vmatpush1.bf16.msra.mxu0 %v2652_v26  ;;  %v2734_v26 = vld [vmem:[%s3054_s21 + $0x8] sm:$0xff] }
 0x33c   : > { %2655 = vmatprep.subr.bf16.mxu1 %v2654_v31  ;;  %2663 = vmatprep.subr.bf16.mxu0 %v2662_v32 }
 0x33e   : > { %2044 = vmatmul.mubr.msk.f32.vlgmr.msra.gmra.mrb[12].mxu1 %vm1121_vm1, %v3846_v19  ;;  %2045 = vmatmul.mubr.msk.f32.vlgmr.msra.gmra.mrb[12].mxu0 %vm1121_vm1, %v3846_v19 }
 0x33f   : > { %2657 = vmatpush1.bf16.msra.mxu1 %v2656_v42  ;;  %2665 = vmatpush1.bf16.msra.mxu0 %v2664_v43  ;;  %v2737_v42 = vld [vmem:[%s3054_s21 + $0x38] sm:$0xff]  ;;  %s2056_s21 = sshll.u32 %s2867_s28, 11  ;;  %s1956_s28 = scalar_lea.sflag [#allocation3], %s269_s19 }
 0x340   : > { %2659 = vmatprep.subr.bf16.mxu1 %v2658_v46  ;;  %2667 = vmatprep.subr.bf16.mxu0 %v2666_v47  ;;  %s4001_s23 = scalar_lea.hbm %s4056_s7, %s2056_s21 }
 0x341   : > { %1703 = vmatprep.mubr.f32.mxu1 %v2804_v39  ;;  %1774 = vmatprep.mubr.f32.mxu0 %v2804_v39 }
 0x343   : > { %2661 = vmatpush1.bf16.msra.mxu1 %v2660_v54  ;;  %2669 = vmatpush1.bf16.msra.mxu0 %v2668_v55 }
 0x344   : > { %2671 = vmatprep.subr.bf16.mxu1 %v2670_v58  ;;  %2679 = vmatprep.subr.bf16.mxu0 %v2678_v59 }
 0x346   : > { %2046 = vmatmul.mubr.msk.f32.vlgmr.msra.gmra.mrb[14].mxu1 %vm1121_vm1, %v3846_v19  ;;  %2047 = vmatmul.mubr.msk.f32.vlgmr.msra.gmra.mrb[14].mxu0 %vm1121_vm1, %v3846_v19 }
 0x347   : > { %2673 = vmatpush1.bf16.msra.mxu1 %v2672_v4  ;;  %2681 = vmatpush1.bf16.msra.mxu0 %v2680_v5 }
 0x348   : > { %2675 = vmatprep.subr.bf16.mxu1 %v2674_v7  ;;  %2683 = vmatprep.subr.bf16.mxu0 %v2682_v8 }
 0x349   : > { %1845 = vmatprep.mubr.f32.mxu1 %v2804_v39  ;;  %1916 = vmatprep.mubr.f32.mxu0 %v2804_v39 }
 0x34b   : > { %2677 = vmatpush1.bf16.msra.mxu1 %v2676_v14  ;;  %2685 = vmatpush1.bf16.msra.mxu0 %v2684_v15 }
 0x34e   : > { %2048 = vmatmul.mubr.msk.f32.vlgmr.msra.gmra.mrb[16].mxu1 %vm1121_vm1, %v3846_v19  ;;  %2049 = vmatmul.mubr.msk.f32.vlgmr.msra.gmra.mrb[16].mxu0 %vm1121_vm1, %v3846_v19 }
 0x409   : > { %v1421_v16 = vpop.f32.mrb[10].mxu1  ;;  %v1492_v17 = vpop.f32.mrb[10].mxu0 }
 0x40a   : > { %v1923_v21 = vmul.f32 %v2732_v18, %v1421_v16  ;;  %v1925_v24 = vmul.f32 %v2733_v23, %v1492_v17  ;;  %v1423_v25 = vpop.f32.mrb[11].mxu1  ;;  %v1494_v39 = vpop.f32.mrb[11].mxu0 }
 0x40b   : > { %v1924_v27 = vmul.f32 %v2734_v26, %v1423_v25  ;;  %v1926_v31 = vmul.f32 %v2735_v30, %v1494_v39 }
 0x40c   : > { %1939 = vst [vmem:[%s3970_s17] sm:$0xff] %v1923_v21  ;;  %1941 = vst [vmem:[%s3970_s17 + $0x10] sm:$0xff] %v1925_v24 }
 0x40d   : > { %1940 = vst [vmem:[%s3970_s17 + $0x8] sm:$0xff] %v1924_v27  ;;  %1942 = vst [vmem:[%s3970_s17 + $0x18] sm:$0xff] %v1926_v31 }
 0x411   : > { %v1563_v19 = vpop.f32.mrb[12].mxu1  ;;  %v1634_v32 = vpop.f32.mrb[12].mxu0 }
 0x412   : > { %v1927_v33 = vmul.f32 %v1563_v19, %v3333_v20  ;;  %v1929_v35 = vmul.f32 %v1634_v32, %v3336_v22  ;;  %v1565_v37 = vpop.f32.mrb[13].mxu1  ;;  %v1636_v38 = vpop.f32.mrb[13].mxu0 }
 0x413   : > { %v1928_v41 = vmul.f32 %v2736_v40, %v1565_v37  ;;  %v1930_v43 = vmul.f32 %v2737_v42, %v1636_v38 }
 0x414   : > { %1943 = vst [vmem:[%s3970_s17 + $0x20] sm:$0xff] %v1927_v33  ;;  %1945 = vst [vmem:[%s3970_s17 + $0x30] sm:$0xff] %v1929_v35 }
 0x415   : > { %1944 = vst [vmem:[%s3970_s17 + $0x28] sm:$0xff] %v1928_v41  ;;  %1946 = vst [vmem:[%s3970_s17 + $0x38] sm:$0xff] %v1930_v43 }
 0x419   : > { %v1705_v44 = vpop.f32.mrb[14].mxu1  ;;  %v1776_v20 = vpop.f32.mrb[14].mxu0 }
 0x41a   : > { %v1931_v22 = vmul.f32 %v1705_v44, %v3541_v60  ;;  %v1933_v45 = vmul.f32 %v1776_v20, %v3544_v62  ;;  %v1707_v46 = vpop.f32.mrb[15].mxu1  ;;  %v1778_v47 = vpop.f32.mrb[15].mxu0 }
 0x41b   : > { %v1932_v48 = vmul.f32 %v1707_v46, %v3364_v34  ;;  %v1934_v49 = vmul.f32 %v1778_v47, %v3368_v36 }
 0x41c   : > { %1947 = vst [vmem:[%s3970_s17 + $0x40] sm:$0xff] %v1931_v22  ;;  %1949 = vst [vmem:[%s3970_s17 + $0x50] sm:$0xff] %v1933_v45 }
 0x41d   : > { %1948 = vst [vmem:[%s3970_s17 + $0x48] sm:$0xff] %v1932_v48  ;;  %1950 = vst [vmem:[%s3970_s17 + $0x58] sm:$0xff] %v1934_v49 }
 0x421   : > { %v1847_v60 = vpop.f32.mrb[16].mxu1  ;;  %v1918_v50 = vpop.f32.mrb[16].mxu0 }
 0x422   : > { %v1935_v62 = vmul.f32 %v1847_v60, %v3713_v28  ;;  %v1937_v34 = vmul.f32 %v1918_v50, %v3716_v29  ;;  %v1849_v51 = vpop.f32.mrb[17].mxu1  ;;  %v1920_v36 = vpop.f32.mrb[17].mxu0 }
 0x423   : > { %v1936_v52 = vmul.f32 %v1849_v51, %v3572_v10  ;;  %v1938_v53 = vmul.f32 %v1920_v36, %v3576_v12 }
 0x424   : > { %1951 = vst [vmem:[%s3970_s17 + $0x60] sm:$0xff] %v1935_v62  ;;  %1953 = vst [vmem:[%s3970_s17 + $0x70] sm:$0xff] %v1937_v34 }
 0x425   : > { %1952 = vst [vmem:[%s3970_s17 + $0x68] sm:$0xff] %v1936_v52  ;;  %1954 = vst [vmem:[%s3970_s17 + $0x78] sm:$0xff] %v1938_v53 }
 0x426   : > { %2751 = shalt.err (!%p2748_p3)
}
 0x427   : > { %s2752_s13 = scalar_lea.hbm %s4001_s23, 2048  ;;  %s2756_s16 = scalar_lea.hbm %s4056_s7, 4096 }
 0x428   : > { %p2753_p4 = scmp.ne.s32.totalorder %s4001_s23, %s2752_s13  ;;  %p2757_p9 = scmp.lt.u32.totalorder %s4001_s23, %s4056_s7 }
 0x429   : > { %p2758_p10 = scmp.lt.u32.totalorder %s2756_s16, %s2752_s13  ;;  %p2760_p12 = scmp.lt.u32.totalorder %s2752_s13, %s4001_s23 }
 0x42a   : > { %p2754_p7 = pnand %p2753_p4, %p2884_p5 }
 0x42b   : > { %p2759_p11 = por %p2758_p10, %p2757_p9 }
 0x42c   : > { %p2755_p8 = pneg %p2754_p7 }
 0x42d   : > { %p2761_p13 = por %p2760_p12, %p2759_p11 }
 0x42f   : > { %p2762_p0 = pnand %p2761_p13, %p2755_p8 }
 0x431   : > { %2765 = shalt.err (!%p2762_p0)
}
 0x432   : > { %2686 = dma.vmem_to_hbm [thread:$0]  (%p2884_p5), %s4003_s18, 2048, %s4001_s23, %s1956_s28  }
 0x433 PF: > { %p2692_p1 = scmp.ge.s32.totalorder %s2800_s27, 2  ;;  %s1982_s20 = sand.u32 1, %s2788_s24  }
 0x434   : > { %s1983_s22 = scalar_lea.sflag [#allocation3], %s1982_s20 }
 0x435   : > { %p2689_p2 = pnand %p2692_p1, %p2888_p6 }
 0x437   : > { %2783 = dma.done.wait (!%p2689_p2), %s1983_s22, 2048  }
 0x438   : > { %2785 = vsyncadd (!%p2689_p2), %s1983_s22, 4294965248  ;;  %p17_p3 = scmp.ge.s32.totalorder %s2871_s30, 4   ;;  %s4059_s24 = smov %s2792_s25 }
 0x439   : > { %s4060_s25 = smov %s2796_s26  ;;  %s4061_s26 = smov %s2882_s10 }
 0x43a   : > { %s4062_s27 = smov %s2871_s30  ;;  %19 = sbr.rel (!%p17_p3) target bundleno = 3 (0x3), region = 83 }
 0x441   :  { %1988 = vsyncpa [#allocation3], 1 }
 0x442   :  { %1990 = vsyncpa [#allocation3 + $0x1], 1 }

</bundles_post_ra>
